<compile_context>
chip_gen: v5e
topology: v5e:2x2
jax: 0.10.0
libtpu: 0.0.40
codegen_flags: <defaults>
</compile_context>

<pallas_src>
import numpy as np
import jax
import jax.numpy as jnp
from jax.experimental import pallas as pl
from jax.experimental.pallas import tpu as pltpu


# ----------------------------- host-side helpers ------------------------------
def _make_gather_mats(H, W, stride):
    """0/1 matrix implementing 3x3 / pad=1 / stride-s im2col as one matmul.

    Returns S of shape (9*Ho*Wo, H*W), rows stacked k-major (row = k*P + p,
    k = ky*3 + kx, p = oy*Wo + ox): S[k*P+p, q] = 1 iff output position p reads
    (unpadded) input position q through tap k.  Zero padding = all-zero rows.
    """
    Ho = (H - 1) // stride + 1
    Wo = (W - 1) // stride + 1
    P = Ho * Wo
    S = np.zeros((9 * P, H * W), np.float32)
    for ky in range(3):
        for kx in range(3):
            k = ky * 3 + kx
            for oy in range(Ho):
                iy = stride * oy + ky - 1
                if not (0 <= iy < H):
                    continue
                for ox in range(Wo):
                    ix = stride * ox + kx - 1
                    if 0 <= ix < W:
                        S[k * P + oy * Wo + ox, iy * W + ix] = 1.0
    return S, Ho, Wo


def _flatten_conv_weight(w):
    """(Cout, Cin, 3, 3) torch layout -> (9*Cin, Cout), rows ordered k-major."""
    cout, cin = w.shape[0], w.shape[1]
    return jnp.transpose(w, (2, 3, 1, 0)).reshape(9 * cin, cout)


def _im2col_input(x_nchw, stride):
    """Host-side im2col of the network input only.

    (N, C, H, W) -> (N, Ho*Wo, 9*C), columns ordered (k, c) k-major, matching
    _flatten_conv_weight's row order.  This is a pure layout op on the tiny
    input image; it removes the biggest tap-selection matrix from the kernel.
    """
    N, C, H, W = x_nchw.shape
    Ho = (H - 1) // stride + 1
    Wo = (W - 1) // stride + 1
    xp = jnp.pad(x_nchw, ((0, 0), (0, 0), (1, 1), (1, 1)))
    taps = []
    for ky in range(3):
        for kx in range(3):
            taps.append(xp[:, :,
                           ky:ky + stride * (Ho - 1) + 1:stride,
                           kx:kx + stride * (Wo - 1) + 1:stride])  # (N,C,Ho,Wo)
    p = jnp.stack(taps, axis=1)            # (N, 9, C, Ho, Wo), axis1 = ky*3+kx
    p = p.transpose(0, 3, 4, 1, 2)         # (N, Ho, Wo, 9, C)
    return p.reshape(N, Ho * Wo, 9 * C), Ho, Wo


# ------------------------------- Pallas kernel --------------------------------
def _disc_kernel(m1_ref, w1_ref, b1_ref,
                 s2_ref, w2_ref, s3_ref, w3_ref,
                 s4_ref, w4_ref, s5_ref, w5_ref, b5_ref, o_ref):
    f32 = jnp.float32
    bf16 = jnp.bfloat16

    def leaky(z):                                  # LeakyReLU(0.2)
        return jnp.where(z > 0, z, 0.2 * z)

    def inorm(z):                                  # InstanceNorm2d(affine=False)
        mean = jnp.mean(z, axis=0, keepdims=True)  # per-channel over spatial
        cen = z - mean
        var = jnp.mean(cen * cen, axis=0, keepdims=True)
        return cen * jax.lax.rsqrt(var + 1e-5)

    def gather_cols(y_f32, s_ref):
        """(Q, C) activation -> (P, 9*C) im2col for the next conv.

        One MXU dot with the k-major stacked 0/1 selection matrix (exact
        selection, zero padding = zero rows), then interleave (k, c) into the
        lane axis with 9 static row-slices + a lane concat (VPU/XLU work).
        """
        P = s_ref.shape[0] // 9
        t = jnp.dot(s_ref[...], y_f32.astype(bf16),
                    preferred_element_type=f32)                    # (9P, C)
        return jnp.concatenate([t[k * P:(k + 1) * P, :] for k in range(9)],
                               axis=1)                             # (P, 9C)

    # Layer 1: conv 3->32, stride 2 (im2col done on host) + bias + LeakyReLU
    z = jnp.dot(m1_ref[0], w1_ref[...], preferred_element_type=f32)  # (64, 32)
    y = leaky(z + b1_ref[...])

    # Layer 2: conv 32->64, stride 2 + InstanceNorm + LeakyReLU (bias cancelled)
    m = gather_cols(y, s2_ref).astype(bf16)                          # (16, 288)
    y = leaky(inorm(jnp.dot(m, w2_ref[...], preferred_element_type=f32)))

    # Layer 3: conv 64->128, stride 2 + InstanceNorm + LeakyReLU
    m = gather_cols(y, s3_ref).astype(bf16)                          # (4, 576)
    y = leaky(inorm(jnp.dot(m, w3_ref[...], preferred_element_type=f32)))

    # Layer 4: conv 128->256, stride 1 + InstanceNorm + LeakyReLU
    m = gather_cols(y, s4_ref).astype(bf16)                          # (4, 1152)
    y = leaky(inorm(jnp.dot(m, w4_ref[...], preferred_element_type=f32)))

    # Layer 5: conv 256->1, stride 1.  Cout=1 -> VPU multiply + lane reduction
    # against a (1, 2304) weight row (no lane-padded MXU dot).
    m = gather_cols(y, s5_ref)                                       # (4, 2304) f32
    z = jnp.sum(m * w5_ref[...].astype(f32), axis=1, keepdims=True)  # (4, 1)
    o_ref[0] = (z + b5_ref[...]).astype(o_ref.dtype)


# --------------------------------- wrapper ------------------------------------
def discriminator_forward(x_nchw, params):
    N = x_nchw.shape[0]
    p1, p2, p3, p4, p5 = params
    bf16 = jnp.bfloat16

    # Layer-1 im2col on the host; input enters the kernel already in bf16.
    m1, h, w_sp = _im2col_input(x_nchw, stride=p1["stride"])
    m1 = m1.astype(bf16)
    P1, K1 = m1.shape[1], m1.shape[2]

    # Tap-selection matrices (k-major stacked, bf16, exact 0/1) for layers 2-5.
    s_mats = []
    for p in (p2, p3, p4, p5):
        S, h, w_sp = _make_gather_mats(h, w_sp, p["stride"])
        s_mats.append(jnp.asarray(S, bf16))
    s2, s3, s4, s5 = s_mats
    Hf, Wf = h, w_sp
    P5 = Hf * Wf

    # Flattened bf16 weights, rows ordered (k, c) k-major (matches gather_cols).
    w1 = _flatten_conv_weight(p1["w"]).astype(bf16)                 # (27, 32)
    w2 = _flatten_conv_weight(p2["w"]).astype(bf16)                 # (288, 64)
    w3 = _flatten_conv_weight(p3["w"]).astype(bf16)                 # (576, 128)
    w4 = _flatten_conv_weight(p4["w"]).astype(bf16)                 # (1152, 256)
    w5 = _flatten_conv_weight(p5["w"]).astype(bf16).reshape(1, -1)  # (1, 2304)
    b1 = p1["b"].reshape(1, -1).astype(jnp.float32)                 # (1, 32)
    b5 = p5["b"].reshape(1, 1).astype(jnp.float32)                  # (1, 1)
    # b2/b3/b4 are intentionally NOT passed: a per-channel conv bias is
    # cancelled exactly by the following InstanceNorm's mean subtraction.

    def resident(shape):   # whole-array block, constant index map -> stays in VMEM
        return pl.BlockSpec(shape, lambda n: (0, 0))

    out = pl.pallas_call(
        _disc_kernel,
        out_shape=jax.ShapeDtypeStruct((N, P5, 1), jnp.float32),
        grid=(N,),
        in_specs=[
            pl.BlockSpec((1, P1, K1), lambda n: (n, 0, 0)),  # per-image im2col input
            resident(w1.shape), resident(b1.shape),
            resident(s2.shape), resident(w2.shape),
            resident(s3.shape), resident(w3.shape),
            resident(s4.shape), resident(w4.shape),
            resident(s5.shape), resident(w5.shape),
            resident(b5.shape),
        ],
        out_specs=pl.BlockSpec((1, P5, 1), lambda n: (n, 0, 0)),
        compiler_params=pltpu.CompilerParams(
            dimension_semantics=("parallel",),     # v7x: one image per TensorCore
            vmem_limit_bytes=16 * 1024 * 1024,     # actual footprint ~2 MiB
        ),
    )(m1, w1, b1, s2, w2, s3, w3, s4, w4, s5, w5, b5)

    # (N, Hf*Wf, 1) -> (N, 1, Hf, Wf) to match the PyTorch output layout.
    return out.reshape(N, Hf, Wf, 1).transpose(0, 3, 1, 2)


# --------------------------- parameter construction ---------------------------
def init_discriminator_params(key):
    channels = [3, 32, 64, 128, 256]
    specs = [
        # (Cin, Cout, stride, use_norm, use_act)
        (channels[0], channels[1], 2, False, True),   # b1
        (channels[1], channels[2], 2, True,  True),   # b2
        (channels[2], channels[3], 2, True,  True),   # b3
        (channels[3], channels[4], 1, True,  True),   # b4
        (channels[4], 1,           1, False, False),  # final conv
    ]
    params = []
    for (cin, cout, stride, use_norm, use_act) in specs:
        key, kw, kb = jax.random.split(key, 3)
        w = 0.05 * jax.random.normal(kw, (cout, cin, 3, 3), dtype=jnp.float32)
        b = 0.05 * jax.random.normal(kb, (cout,), dtype=jnp.float32)
        params.append(dict(w=w, b=b, stride=stride,
                           use_norm=use_norm, use_act=use_act))
    return params


# ----------------------------------- main --------------------------------------
if __name__ == "__main__":
    key = jax.random.PRNGKey(0)
    key, kx = jax.random.split(key)

    # NCHW input matching nn.Conv2d expectations: batch=2, C=3, 16x16 spatial.
    x = jax.random.normal(kx, (2, 3, 16, 16), dtype=jnp.float32)
    params = init_discriminator_params(key)

    out = discriminator_forward(x, params)
    out = jax.block_until_ready(out)

    # Expected output shape: (2, 1, 2, 2)  (16 -> 8 -> 4 -> 2 -> 2 -> 2)
    assert out.shape == (2, 1, 2, 2), out.shape
    print("KERNEL_OK")
</pallas_src>

<mosaic_0001>
module attributes {stable_mosaic.version = 11 : i64} {
  func.func @_disc_kernel(%arg0: i32, %arg1: memref<1x64x27xbf16, #tpu.memory_space<vmem>>, %arg2: memref<27x32xbf16, #tpu.memory_space<vmem>>, %arg3: memref<1x32xf32, #tpu.memory_space<vmem>>, %arg4: memref<144x64xbf16, #tpu.memory_space<vmem>>, %arg5: memref<288x64xbf16, #tpu.memory_space<vmem>>, %arg6: memref<36x16xbf16, #tpu.memory_space<vmem>>, %arg7: memref<576x128xbf16, #tpu.memory_space<vmem>>, %arg8: memref<36x4xbf16, #tpu.memory_space<vmem>>, %arg9: memref<1152x256xbf16, #tpu.memory_space<vmem>>, %arg10: memref<36x4xbf16, #tpu.memory_space<vmem>>, %arg11: memref<1x2304xbf16, #tpu.memory_space<vmem>>, %arg12: memref<1x1xf32, #tpu.memory_space<vmem>>, %arg13: memref<1x4x1xf32, #tpu.memory_space<vmem>>) attributes {dimension_semantics = [#tpu.dimension_semantics<parallel>], iteration_bounds = array<i64: 2>, scalar_prefetch = 0 : i64, scratch_operands = 0 : i64, tpu.core_type = #tpu.core_type<tc>, window_params = [{transform_indices = @transform_0, window_bounds = array<i64: 1, 64, 27>}, {pipeline_mode = #tpu.pipeline_mode<synchronous>, transform_indices = @transform_1, window_bounds = array<i64: 27, 32>}, {pipeline_mode = #tpu.pipeline_mode<synchronous>, transform_indices = @transform_2, window_bounds = array<i64: 1, 32>}, {pipeline_mode = #tpu.pipeline_mode<synchronous>, transform_indices = @transform_3, window_bounds = array<i64: 144, 64>}, {pipeline_mode = #tpu.pipeline_mode<synchronous>, transform_indices = @transform_4, window_bounds = array<i64: 288, 64>}, {pipeline_mode = #tpu.pipeline_mode<synchronous>, transform_indices = @transform_5, window_bounds = array<i64: 36, 16>}, {pipeline_mode = #tpu.pipeline_mode<synchronous>, transform_indices = @transform_6, window_bounds = array<i64: 576, 128>}, {pipeline_mode = #tpu.pipeline_mode<synchronous>, transform_indices = @transform_7, window_bounds = array<i64: 36, 4>}, {pipeline_mode = #tpu.pipeline_mode<synchronous>, transform_indices = @transform_8, window_bounds = array<i64: 1152, 256>}, {pipeline_mode = #tpu.pipeline_mode<synchronous>, transform_indices = @transform_9, window_bounds = array<i64: 36, 4>}, {pipeline_mode = #tpu.pipeline_mode<synchronous>, transform_indices = @transform_10, window_bounds = array<i64: 1, 2304>}, {pipeline_mode = #tpu.pipeline_mode<synchronous>, transform_indices = @transform_11, window_bounds = array<i64: 1, 1>}, {transform_indices = @transform_12, window_bounds = array<i64: 1, 4, 1>}]} {
    %c0 = arith.constant 0 : index
    %c0_0 = arith.constant 0 : index
    %c0_1 = arith.constant 0 : index
    %0 = vector.load %arg1[%c0, %c0_0, %c0_1] : memref<1x64x27xbf16, #tpu.memory_space<vmem>>, vector<1x64x27xbf16>
    %1 = vector.shape_cast %0 : vector<1x64x27xbf16> to vector<64x27xbf16>
    %c0_2 = arith.constant 0 : index
    %c0_3 = arith.constant 0 : index
    %2 = vector.load %arg2[%c0_2, %c0_3] : memref<27x32xbf16, #tpu.memory_space<vmem>>, vector<27x32xbf16>
    %cst = arith.constant dense<0.000000e+00> : vector<64x32xf32>
    %3 = tpu.matmul %1, %2, %cst {dimension_numbers = #tpu.dot_dimension_numbers<[1], [0], [0], [1], [0, 0, 1, 1], [], []>} : vector<64x27xbf16>, vector<27x32xbf16>, vector<64x32xf32> -> vector<64x32xf32>
    %c0_4 = arith.constant 0 : index
    %c0_5 = arith.constant 0 : index
    %4 = vector.load %arg3[%c0_4, %c0_5] : memref<1x32xf32, #tpu.memory_space<vmem>>, vector<1x32xf32>
    %5 = vector.broadcast %4 : vector<1x32xf32> to vector<64x32xf32>
    %6 = arith.addf %3, %5 : vector<64x32xf32>
    %cst_6 = arith.constant 0.000000e+00 : f32
    %7 = vector.broadcast %cst_6 : f32 to vector<64x32xf32>
    %8 = arith.cmpf ogt, %6, %7 : vector<64x32xf32>
    %cst_7 = arith.constant 2.000000e-01 : f32
    %9 = vector.broadcast %cst_7 : f32 to vector<64x32xf32>
    %10 = arith.mulf %9, %6 : vector<64x32xf32>
    %11 = arith.select %8, %6, %10 : vector<64x32xi1>, vector<64x32xf32>
    %c0_8 = arith.constant 0 : index
    %c0_9 = arith.constant 0 : index
    %12 = vector.load %arg4[%c0_8, %c0_9] : memref<144x64xbf16, #tpu.memory_space<vmem>>, vector<144x64xbf16>
    %13 = arith.truncf %11 : vector<64x32xf32> to vector<64x32xbf16>
    %cst_10 = arith.constant dense<0.000000e+00> : vector<144x32xf32>
    %14 = tpu.matmul %12, %13, %cst_10 {dimension_numbers = #tpu.dot_dimension_numbers<[1], [0], [0], [1], [0, 0, 1, 1], [], []>} : vector<144x64xbf16>, vector<64x32xbf16>, vector<144x32xf32> -> vector<144x32xf32>
    %15 = vector.extract_strided_slice %14 {offsets = [0, 0], sizes = [16, 32], strides = [1, 1]} : vector<144x32xf32> to vector<16x32xf32>
    %16 = vector.extract_strided_slice %14 {offsets = [16, 0], sizes = [16, 32], strides = [1, 1]} : vector<144x32xf32> to vector<16x32xf32>
    %17 = vector.extract_strided_slice %14 {offsets = [32, 0], sizes = [16, 32], strides = [1, 1]} : vector<144x32xf32> to vector<16x32xf32>
    %18 = vector.extract_strided_slice %14 {offsets = [48, 0], sizes = [16, 32], strides = [1, 1]} : vector<144x32xf32> to vector<16x32xf32>
    %19 = vector.extract_strided_slice %14 {offsets = [64, 0], sizes = [16, 32], strides = [1, 1]} : vector<144x32xf32> to vector<16x32xf32>
    %20 = vector.extract_strided_slice %14 {offsets = [80, 0], sizes = [16, 32], strides = [1, 1]} : vector<144x32xf32> to vector<16x32xf32>
    %21 = vector.extract_strided_slice %14 {offsets = [96, 0], sizes = [16, 32], strides = [1, 1]} : vector<144x32xf32> to vector<16x32xf32>
    %22 = vector.extract_strided_slice %14 {offsets = [112, 0], sizes = [16, 32], strides = [1, 1]} : vector<144x32xf32> to vector<16x32xf32>
    %23 = vector.extract_strided_slice %14 {offsets = [128, 0], sizes = [16, 32], strides = [1, 1]} : vector<144x32xf32> to vector<16x32xf32>
    %24 = tpu.concatenate %15, %16, %17, %18, %19, %20, %21, %22, %23 in 1 : vector<16x32xf32>, vector<16x32xf32>, vector<16x32xf32>, vector<16x32xf32>, vector<16x32xf32>, vector<16x32xf32>, vector<16x32xf32>, vector<16x32xf32>, vector<16x32xf32> -> vector<16x288xf32>
    %25 = arith.truncf %24 : vector<16x288xf32> to vector<16x288xbf16>
    %c0_11 = arith.constant 0 : index
    %c0_12 = arith.constant 0 : index
    %26 = vector.load %arg5[%c0_11, %c0_12] : memref<288x64xbf16, #tpu.memory_space<vmem>>, vector<288x64xbf16>
    %cst_13 = arith.constant dense<0.000000e+00> : vector<16x64xf32>
    %27 = tpu.matmul %25, %26, %cst_13 {dimension_numbers = #tpu.dot_dimension_numbers<[1], [0], [0], [1], [0, 0, 1, 1], [], []>} : vector<16x288xbf16>, vector<288x64xbf16>, vector<16x64xf32> -> vector<16x64xf32>
    %cst_14 = arith.constant dense<0.000000e+00> : vector<64xf32>
    %28 = vector.multi_reduction <add>, %27, %cst_14 [0] : vector<16x64xf32> to vector<64xf32>
    %29 = vector.shape_cast %28 : vector<64xf32> to vector<1x64xf32>
    %cst_15 = arith.constant 1.600000e+01 : f32
    %30 = vector.broadcast %cst_15 : f32 to vector<1x64xf32>
    %31 = arith.divf %29, %30 : vector<1x64xf32>
    %32 = vector.broadcast %31 : vector<1x64xf32> to vector<16x64xf32>
    %33 = arith.subf %27, %32 : vector<16x64xf32>
    %34 = arith.mulf %33, %33 : vector<16x64xf32>
    %cst_16 = arith.constant dense<0.000000e+00> : vector<64xf32>
    %35 = vector.multi_reduction <add>, %34, %cst_16 [0] : vector<16x64xf32> to vector<64xf32>
    %36 = vector.shape_cast %35 : vector<64xf32> to vector<1x64xf32>
    %cst_17 = arith.constant 1.600000e+01 : f32
    %37 = vector.broadcast %cst_17 : f32 to vector<1x64xf32>
    %38 = arith.divf %36, %37 : vector<1x64xf32>
    %cst_18 = arith.constant 9.99999974E-6 : f32
    %39 = vector.broadcast %cst_18 : f32 to vector<1x64xf32>
    %40 = arith.addf %38, %39 : vector<1x64xf32>
    %41 = math.rsqrt %40 : vector<1x64xf32>
    %42 = vector.broadcast %41 : vector<1x64xf32> to vector<16x64xf32>
    %43 = arith.mulf %33, %42 : vector<16x64xf32>
    %cst_19 = arith.constant 0.000000e+00 : f32
    %44 = vector.broadcast %cst_19 : f32 to vector<16x64xf32>
    %45 = arith.cmpf ogt, %43, %44 : vector<16x64xf32>
    %cst_20 = arith.constant 2.000000e-01 : f32
    %46 = vector.broadcast %cst_20 : f32 to vector<16x64xf32>
    %47 = arith.mulf %46, %43 : vector<16x64xf32>
    %48 = arith.select %45, %43, %47 : vector<16x64xi1>, vector<16x64xf32>
    %c0_21 = arith.constant 0 : index
    %c0_22 = arith.constant 0 : index
    %49 = vector.load %arg6[%c0_21, %c0_22] : memref<36x16xbf16, #tpu.memory_space<vmem>>, vector<36x16xbf16>
    %50 = arith.truncf %48 : vector<16x64xf32> to vector<16x64xbf16>
    %cst_23 = arith.constant dense<0.000000e+00> : vector<36x64xf32>
    %51 = tpu.matmul %49, %50, %cst_23 {dimension_numbers = #tpu.dot_dimension_numbers<[1], [0], [0], [1], [0, 0, 1, 1], [], []>} : vector<36x16xbf16>, vector<16x64xbf16>, vector<36x64xf32> -> vector<36x64xf32>
    %52 = vector.extract_strided_slice %51 {offsets = [0, 0], sizes = [4, 64], strides = [1, 1]} : vector<36x64xf32> to vector<4x64xf32>
    %53 = vector.extract_strided_slice %51 {offsets = [4, 0], sizes = [4, 64], strides = [1, 1]} : vector<36x64xf32> to vector<4x64xf32>
    %54 = vector.extract_strided_slice %51 {offsets = [8, 0], sizes = [4, 64], strides = [1, 1]} : vector<36x64xf32> to vector<4x64xf32>
    %55 = vector.extract_strided_slice %51 {offsets = [12, 0], sizes = [4, 64], strides = [1, 1]} : vector<36x64xf32> to vector<4x64xf32>
    %56 = vector.extract_strided_slice %51 {offsets = [16, 0], sizes = [4, 64], strides = [1, 1]} : vector<36x64xf32> to vector<4x64xf32>
    %57 = vector.extract_strided_slice %51 {offsets = [20, 0], sizes = [4, 64], strides = [1, 1]} : vector<36x64xf32> to vector<4x64xf32>
    %58 = vector.extract_strided_slice %51 {offsets = [24, 0], sizes = [4, 64], strides = [1, 1]} : vector<36x64xf32> to vector<4x64xf32>
    %59 = vector.extract_strided_slice %51 {offsets = [28, 0], sizes = [4, 64], strides = [1, 1]} : vector<36x64xf32> to vector<4x64xf32>
    %60 = vector.extract_strided_slice %51 {offsets = [32, 0], sizes = [4, 64], strides = [1, 1]} : vector<36x64xf32> to vector<4x64xf32>
    %61 = tpu.concatenate %52, %53, %54, %55, %56, %57, %58, %59, %60 in 1 : vector<4x64xf32>, vector<4x64xf32>, vector<4x64xf32>, vector<4x64xf32>, vector<4x64xf32>, vector<4x64xf32>, vector<4x64xf32>, vector<4x64xf32>, vector<4x64xf32> -> vector<4x576xf32>
    %62 = arith.truncf %61 : vector<4x576xf32> to vector<4x576xbf16>
    %c0_24 = arith.constant 0 : index
    %c0_25 = arith.constant 0 : index
    %63 = vector.load %arg7[%c0_24, %c0_25] : memref<576x128xbf16, #tpu.memory_space<vmem>>, vector<576x128xbf16>
    %cst_26 = arith.constant dense<0.000000e+00> : vector<4x128xf32>
    %64 = tpu.matmul %62, %63, %cst_26 {dimension_numbers = #tpu.dot_dimension_numbers<[1], [0], [0], [1], [0, 0, 1, 1], [], []>} : vector<4x576xbf16>, vector<576x128xbf16>, vector<4x128xf32> -> vector<4x128xf32>
    %cst_27 = arith.constant dense<0.000000e+00> : vector<128xf32>
    %65 = vector.multi_reduction <add>, %64, %cst_27 [0] : vector<4x128xf32> to vector<128xf32>
    %66 = vector.shape_cast %65 : vector<128xf32> to vector<1x128xf32>
    %cst_28 = arith.constant 4.000000e+00 : f32
    %67 = vector.broadcast %cst_28 : f32 to vector<1x128xf32>
    %68 = arith.divf %66, %67 : vector<1x128xf32>
    %69 = vector.broadcast %68 : vector<1x128xf32> to vector<4x128xf32>
    %70 = arith.subf %64, %69 : vector<4x128xf32>
    %71 = arith.mulf %70, %70 : vector<4x128xf32>
    %cst_29 = arith.constant dense<0.000000e+00> : vector<128xf32>
    %72 = vector.multi_reduction <add>, %71, %cst_29 [0] : vector<4x128xf32> to vector<128xf32>
    %73 = vector.shape_cast %72 : vector<128xf32> to vector<1x128xf32>
    %cst_30 = arith.constant 4.000000e+00 : f32
    %74 = vector.broadcast %cst_30 : f32 to vector<1x128xf32>
    %75 = arith.divf %73, %74 : vector<1x128xf32>
    %cst_31 = arith.constant 9.99999974E-6 : f32
    %76 = vector.broadcast %cst_31 : f32 to vector<1x128xf32>
    %77 = arith.addf %75, %76 : vector<1x128xf32>
    %78 = math.rsqrt %77 : vector<1x128xf32>
    %79 = vector.broadcast %78 : vector<1x128xf32> to vector<4x128xf32>
    %80 = arith.mulf %70, %79 : vector<4x128xf32>
    %cst_32 = arith.constant 0.000000e+00 : f32
    %81 = vector.broadcast %cst_32 : f32 to vector<4x128xf32>
    %82 = arith.cmpf ogt, %80, %81 : vector<4x128xf32>
    %cst_33 = arith.constant 2.000000e-01 : f32
    %83 = vector.broadcast %cst_33 : f32 to vector<4x128xf32>
    %84 = arith.mulf %83, %80 : vector<4x128xf32>
    %85 = arith.select %82, %80, %84 : vector<4x128xi1>, vector<4x128xf32>
    %c0_34 = arith.constant 0 : index
    %c0_35 = arith.constant 0 : index
    %86 = vector.load %arg8[%c0_34, %c0_35] : memref<36x4xbf16, #tpu.memory_space<vmem>>, vector<36x4xbf16>
    %87 = arith.truncf %85 : vector<4x128xf32> to vector<4x128xbf16>
    %cst_36 = arith.constant dense<0.000000e+00> : vector<36x128xf32>
    %88 = tpu.matmul %86, %87, %cst_36 {dimension_numbers = #tpu.dot_dimension_numbers<[1], [0], [0], [1], [0, 0, 1, 1], [], []>} : vector<36x4xbf16>, vector<4x128xbf16>, vector<36x128xf32> -> vector<36x128xf32>
    %89 = vector.extract_strided_slice %88 {offsets = [0, 0], sizes = [4, 128], strides = [1, 1]} : vector<36x128xf32> to vector<4x128xf32>
    %90 = vector.extract_strided_slice %88 {offsets = [4, 0], sizes = [4, 128], strides = [1, 1]} : vector<36x128xf32> to vector<4x128xf32>
    %91 = vector.extract_strided_slice %88 {offsets = [8, 0], sizes = [4, 128], strides = [1, 1]} : vector<36x128xf32> to vector<4x128xf32>
    %92 = vector.extract_strided_slice %88 {offsets = [12, 0], sizes = [4, 128], strides = [1, 1]} : vector<36x128xf32> to vector<4x128xf32>
    %93 = vector.extract_strided_slice %88 {offsets = [16, 0], sizes = [4, 128], strides = [1, 1]} : vector<36x128xf32> to vector<4x128xf32>
    %94 = vector.extract_strided_slice %88 {offsets = [20, 0], sizes = [4, 128], strides = [1, 1]} : vector<36x128xf32> to vector<4x128xf32>
    %95 = vector.extract_strided_slice %88 {offsets = [24, 0], sizes = [4, 128], strides = [1, 1]} : vector<36x128xf32> to vector<4x128xf32>
    %96 = vector.extract_strided_slice %88 {offsets = [28, 0], sizes = [4, 128], strides = [1, 1]} : vector<36x128xf32> to vector<4x128xf32>
    %97 = vector.extract_strided_slice %88 {offsets = [32, 0], sizes = [4, 128], strides = [1, 1]} : vector<36x128xf32> to vector<4x128xf32>
    %98 = tpu.concatenate %89, %90, %91, %92, %93, %94, %95, %96, %97 in 1 : vector<4x128xf32>, vector<4x128xf32>, vector<4x128xf32>, vector<4x128xf32>, vector<4x128xf32>, vector<4x128xf32>, vector<4x128xf32>, vector<4x128xf32>, vector<4x128xf32> -> vector<4x1152xf32>
    %99 = arith.truncf %98 : vector<4x1152xf32> to vector<4x1152xbf16>
    %c0_37 = arith.constant 0 : index
    %c0_38 = arith.constant 0 : index
    %100 = vector.load %arg9[%c0_37, %c0_38] : memref<1152x256xbf16, #tpu.memory_space<vmem>>, vector<1152x256xbf16>
    %cst_39 = arith.constant dense<0.000000e+00> : vector<4x256xf32>
    %101 = tpu.matmul %99, %100, %cst_39 {dimension_numbers = #tpu.dot_dimension_numbers<[1], [0], [0], [1], [0, 0, 1, 1], [], []>} : vector<4x1152xbf16>, vector<1152x256xbf16>, vector<4x256xf32> -> vector<4x256xf32>
    %cst_40 = arith.constant dense<0.000000e+00> : vector<256xf32>
    %102 = vector.multi_reduction <add>, %101, %cst_40 [0] : vector<4x256xf32> to vector<256xf32>
    %103 = vector.shape_cast %102 : vector<256xf32> to vector<1x256xf32>
    %cst_41 = arith.constant 4.000000e+00 : f32
    %104 = vector.broadcast %cst_41 : f32 to vector<1x256xf32>
    %105 = arith.divf %103, %104 : vector<1x256xf32>
    %106 = vector.broadcast %105 : vector<1x256xf32> to vector<4x256xf32>
    %107 = arith.subf %101, %106 : vector<4x256xf32>
    %108 = arith.mulf %107, %107 : vector<4x256xf32>
    %cst_42 = arith.constant dense<0.000000e+00> : vector<256xf32>
    %109 = vector.multi_reduction <add>, %108, %cst_42 [0] : vector<4x256xf32> to vector<256xf32>
    %110 = vector.shape_cast %109 : vector<256xf32> to vector<1x256xf32>
    %cst_43 = arith.constant 4.000000e+00 : f32
    %111 = vector.broadcast %cst_43 : f32 to vector<1x256xf32>
    %112 = arith.divf %110, %111 : vector<1x256xf32>
    %cst_44 = arith.constant 9.99999974E-6 : f32
    %113 = vector.broadcast %cst_44 : f32 to vector<1x256xf32>
    %114 = arith.addf %112, %113 : vector<1x256xf32>
    %115 = math.rsqrt %114 : vector<1x256xf32>
    %116 = vector.broadcast %115 : vector<1x256xf32> to vector<4x256xf32>
    %117 = arith.mulf %107, %116 : vector<4x256xf32>
    %cst_45 = arith.constant 0.000000e+00 : f32
    %118 = vector.broadcast %cst_45 : f32 to vector<4x256xf32>
    %119 = arith.cmpf ogt, %117, %118 : vector<4x256xf32>
    %cst_46 = arith.constant 2.000000e-01 : f32
    %120 = vector.broadcast %cst_46 : f32 to vector<4x256xf32>
    %121 = arith.mulf %120, %117 : vector<4x256xf32>
    %122 = arith.select %119, %117, %121 : vector<4x256xi1>, vector<4x256xf32>
    %c0_47 = arith.constant 0 : index
    %c0_48 = arith.constant 0 : index
    %123 = vector.load %arg10[%c0_47, %c0_48] : memref<36x4xbf16, #tpu.memory_space<vmem>>, vector<36x4xbf16>
    %124 = arith.truncf %122 : vector<4x256xf32> to vector<4x256xbf16>
    %cst_49 = arith.constant dense<0.000000e+00> : vector<36x256xf32>
    %125 = tpu.matmul %123, %124, %cst_49 {dimension_numbers = #tpu.dot_dimension_numbers<[1], [0], [0], [1], [0, 0, 1, 1], [], []>} : vector<36x4xbf16>, vector<4x256xbf16>, vector<36x256xf32> -> vector<36x256xf32>
    %126 = vector.extract_strided_slice %125 {offsets = [0, 0], sizes = [4, 256], strides = [1, 1]} : vector<36x256xf32> to vector<4x256xf32>
    %127 = vector.extract_strided_slice %125 {offsets = [4, 0], sizes = [4, 256], strides = [1, 1]} : vector<36x256xf32> to vector<4x256xf32>
    %128 = vector.extract_strided_slice %125 {offsets = [8, 0], sizes = [4, 256], strides = [1, 1]} : vector<36x256xf32> to vector<4x256xf32>
    %129 = vector.extract_strided_slice %125 {offsets = [12, 0], sizes = [4, 256], strides = [1, 1]} : vector<36x256xf32> to vector<4x256xf32>
    %130 = vector.extract_strided_slice %125 {offsets = [16, 0], sizes = [4, 256], strides = [1, 1]} : vector<36x256xf32> to vector<4x256xf32>
    %131 = vector.extract_strided_slice %125 {offsets = [20, 0], sizes = [4, 256], strides = [1, 1]} : vector<36x256xf32> to vector<4x256xf32>
    %132 = vector.extract_strided_slice %125 {offsets = [24, 0], sizes = [4, 256], strides = [1, 1]} : vector<36x256xf32> to vector<4x256xf32>
    %133 = vector.extract_strided_slice %125 {offsets = [28, 0], sizes = [4, 256], strides = [1, 1]} : vector<36x256xf32> to vector<4x256xf32>
    %134 = vector.extract_strided_slice %125 {offsets = [32, 0], sizes = [4, 256], strides = [1, 1]} : vector<36x256xf32> to vector<4x256xf32>
    %135 = tpu.concatenate %126, %127, %128, %129, %130, %131, %132, %133, %134 in 1 : vector<4x256xf32>, vector<4x256xf32>, vector<4x256xf32>, vector<4x256xf32>, vector<4x256xf32>, vector<4x256xf32>, vector<4x256xf32>, vector<4x256xf32>, vector<4x256xf32> -> vector<4x2304xf32>
    %c0_50 = arith.constant 0 : index
    %c0_51 = arith.constant 0 : index
    %136 = vector.load %arg11[%c0_50, %c0_51] : memref<1x2304xbf16, #tpu.memory_space<vmem>>, vector<1x2304xbf16>
    %137 = arith.extf %136 : vector<1x2304xbf16> to vector<1x2304xf32>
    %138 = vector.broadcast %137 : vector<1x2304xf32> to vector<4x2304xf32>
    %139 = arith.mulf %135, %138 : vector<4x2304xf32>
    %cst_52 = arith.constant dense<0.000000e+00> : vector<4xf32>
    %140 = vector.multi_reduction <add>, %139, %cst_52 [1] : vector<4x2304xf32> to vector<4xf32>
    %141 = vector.shape_cast %140 : vector<4xf32> to vector<4x1xf32>
    %c0_53 = arith.constant 0 : index
    %c0_54 = arith.constant 0 : index
    %142 = vector.load %arg12[%c0_53, %c0_54] : memref<1x1xf32, #tpu.memory_space<vmem>>, vector<1x1xf32>
    %143 = vector.broadcast %142 : vector<1x1xf32> to vector<4x1xf32>
    %144 = arith.addf %141, %143 : vector<4x1xf32>
    %c0_55 = arith.constant 0 : index
    %c0_56 = arith.constant 0 : index
    %c0_57 = arith.constant 0 : index
    %145 = vector.load %arg13[%c0_55, %c0_56, %c0_57] : memref<1x4x1xf32, #tpu.memory_space<vmem>>, vector<1x4x1xf32>
    %146 = vector.shape_cast %145 : vector<1x4x1xf32> to vector<4x1xf32>
    %147 = vector.shape_cast %144 : vector<4x1xf32> to vector<1x4x1xf32>
    tpu.vector_store %arg13[%c0_55, %c0_56, %c0_57], %147 {strides = array<i32>} : memref<1x4x1xf32, #tpu.memory_space<vmem>>, vector<1x4x1xf32>,
    return
  }
  func.func @transform_0(%arg0: i32) -> (i32, i32, i32) {
    %c0_i32 = arith.constant 0 : i32
    %c0_i32_0 = arith.constant 0 : i32
    %c0_i32_1 = arith.constant 0 : i32
    return %arg0, %c0_i32, %c0_i32_0 : i32, i32, i32
  }
  func.func @transform_1(%arg0: i32) -> (i32, i32) {
    %c0_i32 = arith.constant 0 : i32
    %c0_i32_0 = arith.constant 0 : i32
    %c0_i32_1 = arith.constant 0 : i32
    return %c0_i32, %c0_i32_0 : i32, i32
  }
  func.func @transform_2(%arg0: i32) -> (i32, i32) {
    %c0_i32 = arith.constant 0 : i32
    %c0_i32_0 = arith.constant 0 : i32
    %c0_i32_1 = arith.constant 0 : i32
    return %c0_i32, %c0_i32_0 : i32, i32
  }
  func.func @transform_3(%arg0: i32) -> (i32, i32) {
    %c0_i32 = arith.constant 0 : i32
    %c0_i32_0 = arith.constant 0 : i32
    %c0_i32_1 = arith.constant 0 : i32
    return %c0_i32, %c0_i32_0 : i32, i32
  }
  func.func @transform_4(%arg0: i32) -> (i32, i32) {
    %c0_i32 = arith.constant 0 : i32
    %c0_i32_0 = arith.constant 0 : i32
    %c0_i32_1 = arith.constant 0 : i32
    return %c0_i32, %c0_i32_0 : i32, i32
  }
  func.func @transform_5(%arg0: i32) -> (i32, i32) {
    %c0_i32 = arith.constant 0 : i32
    %c0_i32_0 = arith.constant 0 : i32
    %c0_i32_1 = arith.constant 0 : i32
    return %c0_i32, %c0_i32_0 : i32, i32
  }
  func.func @transform_6(%arg0: i32) -> (i32, i32) {
    %c0_i32 = arith.constant 0 : i32
    %c0_i32_0 = arith.constant 0 : i32
    %c0_i32_1 = arith.constant 0 : i32
    return %c0_i32, %c0_i32_0 : i32, i32
  }
  func.func @transform_7(%arg0: i32) -> (i32, i32) {
    %c0_i32 = arith.constant 0 : i32
    %c0_i32_0 = arith.constant 0 : i32
    %c0_i32_1 = arith.constant 0 : i32
    return %c0_i32, %c0_i32_0 : i32, i32
  }
  func.func @transform_8(%arg0: i32) -> (i32, i32) {
    %c0_i32 = arith.constant 0 : i32
    %c0_i32_0 = arith.constant 0 : i32
    %c0_i32_1 = arith.constant 0 : i32
    return %c0_i32, %c0_i32_0 : i32, i32
  }
  func.func @transform_9(%arg0: i32) -> (i32, i32) {
    %c0_i32 = arith.constant 0 : i32
    %c0_i32_0 = arith.constant 0 : i32
    %c0_i32_1 = arith.constant 0 : i32
    return %c0_i32, %c0_i32_0 : i32, i32
  }
  func.func @transform_10(%arg0: i32) -> (i32, i32) {
    %c0_i32 = arith.constant 0 : i32
    %c0_i32_0 = arith.constant 0 : i32
    %c0_i32_1 = arith.constant 0 : i32
    return %c0_i32, %c0_i32_0 : i32, i32
  }
  func.func @transform_11(%arg0: i32) -> (i32, i32) {
    %c0_i32 = arith.constant 0 : i32
    %c0_i32_0 = arith.constant 0 : i32
    %c0_i32_1 = arith.constant 0 : i32
    return %c0_i32, %c0_i32_0 : i32, i32
  }
  func.func @transform_12(%arg0: i32) -> (i32, i32, i32) {
    %c0_i32 = arith.constant 0 : i32
    %c0_i32_0 = arith.constant 0 : i32
    %c0_i32_1 = arith.constant 0 : i32
    return %arg0, %c0_i32, %c0_i32_0 : i32, i32, i32
  }
}

</mosaic_0001>

<bundles_post_ra>
// kernel: tpu_custom_call.1
= control target key start
LH: loop header
LB: loop body
LE: loop exit
PB: predicated region body
PF: predicated region fallthrough
CT: control target
= control target key end

     0   :  { %s4766_s0 = inlined_call_operand.vmem [shape: bf16[2,64,27], index: 0, kind: input, shape index: {}]   ;;  %s4767_s1 = inlined_call_operand.vmem [shape: bf16[27,32], index: 1, kind: input, shape index: {}]   ;;  %s4768_s2 = inlined_call_operand.vmem [shape: f32[1,32], index: 2, kind: input, shape index: {}]   ;;  %s4769_s3 = inlined_call_operand.vmem [shape: bf16[144,64], index: 3, kind: input, shape index: {}]   ;;  %s4770_s4 = inlined_call_operand.vmem [shape: bf16[288,64], index: 4, kind: input, shape index: {}]   ;;  %s4771_s5 = inlined_call_operand.vmem [shape: bf16[36,16], index: 5, kind: input, shape index: {}]   ;;  %s4772_s6 = inlined_call_operand.vmem [shape: bf16[576,128], index: 6, kind: input, shape index: {}]   ;;  %s4773_s7 = inlined_call_operand.vmem [shape: bf16[36,4], index: 7, kind: input, shape index: {}]   ;;  %s4774_s8 = inlined_call_operand.hbm [shape: bf16[1152,256], index: 8, kind: input, shape index: {}]   ;;  %s4775_s9 = inlined_call_operand.vmem [shape: bf16[36,4], index: 9, kind: input, shape index: {}]   ;;  %s4776_s10 = inlined_call_operand.vmem [shape: bf16[1,2304], index: 10, kind: input, shape index: {}]   ;;  %s4777_s11 = inlined_call_operand.<no memory space> [shape: f32[1,1], index: 11, kind: input, shape index: {}]   ;;  %s4778_s12 = inlined_call_operand.vmem [shape: f32[2,4,1], index: 12, kind: output, shape index: {}]  }
   0x1   :  { %v17_v0 = vstv %s4777_s11 }
   0x2   :  { %18 = vst [vmem:[#allocation2] sm:$0x1] %v17_v0 }
   0x3   :  { %19 = vsyncpa [#allocation4], 0  ;;  %s4353_s23 = smov 0  }
   0x4 LB: > { %s345_s26 = sshll.u32 %s4774_s8, 4  ;;  %s3023_s27 = sadd.s32 4294967295, %s4274_s23   ;;  %s4274_s23 = sphi %s4353_s23, %s25_s23   ;;  %s346_s26 = int_to_ptr.hbm [resolvable:$true] %s345_s26 }
   0x5   : > { %p3025_p0 = scmp.ge.s32.totalorder %s4274_s23, 1  ;;  %p313_p1 = scmp.lt.s32.totalorder %s4274_s23, 3 }
   0x6   : > { %p4166_p2 = scmp.eq.s32.totalorder %s3023_s27, 0  ;;  %s4276_s11 = smov [#allocation3]  }
   0x7   : > { %p314_p3 = pnand %p3025_p0, %p313_p1  ;;  %s347_s28 = sshll.u32 %s4276_s11, 4  ;;  %s348_s28 = int_to_ptr.vmem [resolvable:$true] %s347_s28 }
   0x8   : > { %s4277_s29 = smov 128   ;;  %s4278_s30 = smov 8  }
   0x9   : > { %p4162_p4 = pneg %p314_p3  ;;  %380 = sbr.rel (%p314_p3) target bundleno = 2024 (0x7e8), region = 68 }
   0xb   : > { %p4163_p5 = pnand %p4166_p2, %p4162_p4 }
   0xd   : > { %4165 = dma.hbm_to_vmem [thread:$0]  (!%p4163_p5), %s346_s26, 18432, %s348_s28, [#allocation4], %s4277_s29, %s4277_s29, %s4278_s30  }
   0xe   : > { %4269 = dma.done.wait (%p4166_p2), [#allocation4], 18432  }
   0xf   : > { %4271 = vsyncadd (%p4166_p2), [#allocation4], 4294948864  ;;  %vm492_vm0 = vcmask 1044480   ;;  %p422_p6 = scmp.lt.s32.totalorder %s3023_s27, 1  ;;  %vm493_vm1 = vcmask 1045504   ;;  %v4279_v1 = vmov 65535  }
  0x10   : > { %v494_v2 = vsel %vm492_vm0, 4294967295, %v4279_v1  ;;  %v3055_v3 = vld [vmem:[%s4767_s1 + $0x8] sm:$0xf]  ;;  %v3944_v4 = vld [vmem:[%s4767_s1 + $0x8] sm:$0x30]  ;;  %v3943_v8 = vld [vmem:[%s4767_s1] sm:$0xff] }
  0x11   : > { %s4780_s27 = smov (!%p422_p6, %s3023_s27), 1  ;;  %v495_v5 = vsel %vm493_vm1, %v494_v2, 0  ;;  %v3056_v6 = vor.u32 %v3944_v4, %v3055_v3  ;;  %vm479_vm2 = vcmask 220160   ;;  %v4220_v20 = vld [vmem:[%s4768_s2] ss:$0 sm:$0xff]  ;;  %vm619_vm11 = vcmask 523264  }
  0x12   : > { %s3938_s17 = sshll.u32 %s4780_s27, 5  ;;  %v3945_v50 = vld [vmem:[%s4769_s3] sm:$0xff]  ;;  %v3946_v51 = vld [vmem:[%s4769_s3 + $0x8] sm:$0xff]  ;;  %v3947_v52 = vld [vmem:[%s4769_s3 + $0x10] sm:$0xff]  ;;  %s4280_s25 = smov 32   ;;  %vm749_vm12 = vcmask 261120  }
  0x13   : > { %v497_v7 = vand.u32 %v3056_v6, %v495_v5  ;;  %s426_s22 = scalar_lea.vmem %s4766_s0, %s3938_s17  ;;  %v3948_v53 = vld [vmem:[%s4769_s3 + $0x18] sm:$0xff]  ;;  %v3949_v54 = vld [vmem:[%s4769_s3 + $0x20] sm:$0xff]  ;;  %v3950_v55 = vld [vmem:[%s4769_s3 + $0x28] sm:$0xff]  ;;  %s4281_s28 = smov 64   ;;  %vm754_vm13 = vcmask 785408  }
  0x14   : > { %v3939_v9 = vld [vmem:[%s426_s22] sm:$0xff]  ;;  %v3940_v10 = vld [vmem:[%s426_s22 + $0x8] sm:$0xff]  ;;  %v3941_v11 = vld [vmem:[%s426_s22 + $0x10] sm:$0xff]  ;;  %s4282_s29 = smov 96   ;;  %s3032_s13 = sshll.u32 %s4780_s27, 2 }
  0x15   : > { %505 = vmatpush.bf16.msra.mxu0 %v497_v7  ;;  %v3942_v12 = vld [vmem:[%s426_s22 + $0x18] sm:$0xff]  ;;  %v3951_v56 = vld [vmem:[%s4769_s3 + $0x30] sm:$0xff]  ;;  %v3953_v0 = vld [vmem:[%s4769_s3 + $0x40] sm:$0xff]  ;;  %s430_s16 = scalar_lea.vmem %s4778_s12, %s3032_s13 }
  0x16   : > { %v3952_v57 = vld [vmem:[%s4769_s3 + $0x38] sm:$0xff] }
  0x19   : > { %506 = vmatpush.bf16.msra.mxu0 %v3943_v8 }
  0x1c   : > { %3057 = vmatmul.msk.bf16.vlgmr.msra.gmra.mxu0 %vm479_vm2, %v3939_v9 }
  0x2c   : > { %3058 = vmatmul.msk.bf16.gmra.mxu0 %vm479_vm2, %v3940_v10 }
  0x3c   : > { %3059 = vmatmul.msk.bf16.gmra.mxu0 %vm479_vm2, %v3941_v11 }
  0x4c   : > { %3060 = vmatmul.msk.bf16.gmra.mxu0 %vm479_vm2, %v3942_v12 }
  0x99   : > { %v508_v13 = vpop.f32.mrf.mxu0 }
  0x9a   : > { %v509_v38 = vadd.f32 %v4220_v20, %v508_v13 }
  0x9c   : > { %v536_v44 = vmul.f32 0.2, %v509_v38  ;;  %vm528_vm10 = vcmp.gt.f32.partialorder %v509_v38, 0.0 }
  0x9e   : > { %v544_v48 = vsel %vm528_vm10, %v509_v38, %v536_v44 }
  0xa1   : > { %v510_v14 = vpop.f32.mrf.mxu0 }
  0xa2   : > { %v511_v35 = vadd.f32 %v4220_v20, %v510_v14 }
  0xa4   : > { %v537_v42 = vmul.f32 0.2, %v511_v35  ;;  %vm529_vm9 = vcmp.gt.f32.partialorder %v511_v35, 0.0 }
  0xa6   : > { %v545_v47 = vsel %vm529_vm9, %v511_v35, %v537_v42 }
  0xa7   : > { %v570_v49 = vpack.c.bf16 %v545_v47, %v544_v48  ;;  %v3963_v48 = vld [vmem:[%s4770_s4 + $0x48] sm:$0xff] }
  0xa9   : > { %v513_v15 = vpop.f32.mrf.mxu0 }
  0xaa   : > { %v514_v30 = vadd.f32 %v4220_v20, %v513_v15  ;;  %v3961_v15 = vld [vmem:[%s4770_s4 + $0x38] sm:$0xff] }
  0xab   : > { %913 = vmatpush.bf16.msra.mxu2 %v3961_v15 }
  0xac   : > { %v538_v39 = vmul.f32 0.2, %v514_v30  ;;  %vm530_vm8 = vcmp.gt.f32.partialorder %v514_v30, 0.0 }
  0xae   : > { %v546_v45 = vsel %vm530_vm8, %v514_v30, %v538_v39  ;;  %v3966_v30 = vld [vmem:[%s4770_s4 + $0x60] sm:$0xff] }
  0xb1   : > { %v515_v16 = vpop.f32.mrf.mxu0 }
  0xb2   : > { %v516_v27 = vadd.f32 %v4220_v20, %v515_v16  ;;  %v3960_v16 = vld [vmem:[%s4770_s4 + $0x30] sm:$0xff] }
  0xb3   : > { %914 = vmatpush.bf16.msra.mxu2 %v3960_v16 }
  0xb4   : > { %v539_v36 = vmul.f32 0.2, %v516_v27  ;;  %vm531_vm7 = vcmp.gt.f32.partialorder %v516_v27, 0.0 }
  0xb6   : > { %v547_v43 = vsel %vm531_vm7, %v516_v27, %v539_v36  ;;  %v3967_v27 = vld [vmem:[%s4770_s4 + $0x68] sm:$0xff] }
  0xb7   : > { %v571_v46 = vpack.c.bf16 %v547_v43, %v546_v45  ;;  %v3964_v43 = vld [vmem:[%s4770_s4 + $0x50] sm:$0xff] }
  0xb9   : > { %v518_v17 = vpop.f32.mrf.mxu0 }
  0xba   : > { %v519_v24 = vadd.f32 %v4220_v20, %v518_v17  ;;  %v3959_v17 = vld [vmem:[%s4770_s4 + $0x28] sm:$0xff] }
  0xbb   : > { %915 = vmatpush.bf16.msra.mxu2 %v3959_v17 }
  0xbc   : > { %v540_v31 = vmul.f32 0.2, %v519_v24  ;;  %vm532_vm6 = vcmp.gt.f32.partialorder %v519_v24, 0.0 }
  0xbe   : > { %v548_v40 = vsel %vm532_vm6, %v519_v24, %v540_v31  ;;  %v3954_v24 = vld [vmem:[%s4770_s4] sm:$0xff] }
  0xbf   : > { %v3970_v31 = vld [vmem:[%s4770_s4 + $0x80] sm:$0xff] }
  0xc1   : > { %v520_v18 = vpop.f32.mrf.mxu0 }
  0xc2   : > { %v521_v22 = vadd.f32 %v4220_v20, %v520_v18 }
  0xc4   : > { %v541_v28 = vmul.f32 0.2, %v521_v22  ;;  %vm533_vm5 = vcmp.gt.f32.partialorder %v521_v22, 0.0 }
  0xc6   : > { %v549_v37 = vsel %vm533_vm5, %v521_v22, %v541_v28  ;;  %v3956_v22 = vld [vmem:[%s4770_s4 + $0x10] sm:$0xff]  ;;  %vm1442_vm5 = vcmask 1043456  }
  0xc7   : > { %v572_v41 = vpack.c.bf16 %v549_v37, %v548_v40 }
  0xc9   : > { %v523_v19 = vpop.f32.mrf.mxu0 }
  0xca   : > { %v524_v21 = vadd.f32 %v4220_v20, %v523_v19 }
  0xcc   : > { %v542_v25 = vmul.f32 0.2, %v524_v21  ;;  %vm534_vm3 = vcmp.gt.f32.partialorder %v524_v21, 0.0 }
  0xce   : > { %v550_v32 = vsel %vm534_vm3, %v524_v21, %v542_v25  ;;  %v3957_v21 = vld [vmem:[%s4770_s4 + $0x18] sm:$0xff] }
  0xcf   : > { %v3969_v25 = vld [vmem:[%s4770_s4 + $0x78] sm:$0xff] }
  0xd0   : > { %927 = vmatpush.bf16.msra.mxu3 %v3969_v25 }
  0xd1   : > { %v525_v23 = vpop.f32.mrf.mxu0 }
  0xd2   : > { %v526_v26 = vadd.f32 %v4220_v20, %v525_v23  ;;  %v3958_v20 = vld [vmem:[%s4770_s4 + $0x20] sm:$0xff]  ;;  %v3955_v23 = vld [vmem:[%s4770_s4 + $0x8] sm:$0xff] }
  0xd3   : > { %916 = vmatpush.bf16.msra.mxu2 %v3958_v20 }
  0xd4   : > { %v543_v29 = vmul.f32 0.2, %v526_v26  ;;  %vm535_vm4 = vcmp.gt.f32.partialorder %v526_v26, 0.0 }
  0xd6   : > { %v551_v33 = vsel %vm535_vm4, %v526_v26, %v543_v29  ;;  %v3968_v26 = vld [vmem:[%s4770_s4 + $0x70] sm:$0xff]  ;;  %v3971_v29 = vld [vmem:[%s4770_s4 + $0x88] sm:$0xff]  ;;  %vm1024_vm4 = vcmask 130048  }
  0xd7   : > { %v573_v34 = vpack.c.bf16 %v551_v33, %v550_v32  ;;  %917 = vmatpush.bf16.msra.mxu2 %v3957_v21  ;;  %928 = vmatpush.bf16.msra.mxu3 %v3968_v26  ;;  %v3965_v33 = vld [vmem:[%s4770_s4 + $0x58] sm:$0xff] }
  0xd9   : > { %651 = vmatpush.bf16.msra.mxu1 %v573_v34 }
  0xdb   : > { %918 = vmatpush.bf16.msra.mxu2 %v3956_v22  ;;  %929 = vmatpush.bf16.msra.mxu3 %v3967_v27 }
  0xdd   : > { %652 = vmatpush.bf16.msra.mxu1 %v572_v41 }
  0xdf   : > { %919 = vmatpush.bf16.msra.mxu2 %v3955_v23  ;;  %930 = vmatpush.bf16.msra.mxu3 %v3966_v30 }
  0xe1   : > { %653 = vmatpush.bf16.msra.mxu1 %v571_v46 }
  0xe3   : > { %920 = vmatpush.bf16.msra.mxu2 %v3954_v24  ;;  %931 = vmatpush.bf16.msra.mxu3 %v3965_v33 }
  0xe5   : > { %654 = vmatpush.bf16.msra.mxu1 %v570_v49 }
  0xe7   : > { %947 = vmatpush.bf16.msrb.mxu2 %v3971_v29  ;;  %932 = vmatpush.bf16.msra.mxu3 %v3964_v43 }
  0xe8   : > { %3097 = vmatmul.msk.bf16.vlgmr.msra.gmra.mxu1 %vm619_vm11, %v3945_v50 }
  0xeb   : > { %948 = vmatpush.bf16.msrb.mxu2 %v3970_v31  ;;  %933 = vmatpush.bf16.msra.mxu3 %v3963_v48 }
  0xf8   : > { %3098 = vmatmul.msk.bf16.gmra.mxu1 %vm619_vm11, %v3946_v51  ;;  %v3962_v51 = vld [vmem:[%s4770_s4 + $0x40] sm:$0xff] }
  0xf9   : > { %934 = vmatpush.bf16.msra.mxu3 %v3962_v51 }
 0x108   : > { %3099 = vmatmul.msk.bf16.gmra.mxu1 %vm619_vm11, %v3947_v52 }
 0x118   : > { %3100 = vmatmul.msk.bf16.gmra.mxu1 %vm619_vm11, %v3948_v53 }
 0x128   : > { %3101 = vmatmul.msk.bf16.gmra.mxu1 %vm619_vm11, %v3949_v54 }
 0x138   : > { %3102 = vmatmul.msk.bf16.gmra.mxu1 %vm619_vm11, %v3950_v55 }
 0x148   : > { %3103 = vmatmul.msk.bf16.gmra.mxu1 %vm619_vm11, %v3951_v56 }
 0x158   : > { %3104 = vmatmul.msk.bf16.gmra.mxu1 %vm619_vm11, %v3952_v57 }
 0x165   : > { %v4414_v58 = vpop.f32.mrf.mxu1 }
 0x168   : > { %3105 = vmatmul.msk.bf16.gmra.mxu1 %vm619_vm11, %v3953_v0 }
 0x16d   : > { %v4416_v59 = vpop.f32.mrf.mxu1 }
 0x175   : > { %v661_v60 = vpop.f32.mrf.mxu1 }
 0x17d   : > { %v663_v61 = vpop.f32.mrf.mxu1 }
 0x17e   : > { %v4185_v62 = vpack.i.bf16 %v663_v61, %v661_v60 }
 0x180   : > { %4186 = vrot.lane.b32.xlu0 %v4185_v62, %s4280_s25 }
 0x185   : > { %v666_v63 = vpop.f32.mrf.mxu1 }
 0x18d   : > { %v668_v1 = vpop.f32.mrf.mxu1 }
 0x18e   : > { %v4190_v2 = vpack.i.bf16 %v668_v1, %v666_v63 }
 0x190   : > { %4191 = vrot.lane.b32.xlu0 %v4190_v2, %s4281_s28 }
 0x195   : > { %v671_v3 = vpop.f32.mrf.mxu1 }
 0x19d   : > { %v673_v4 = vpop.f32.mrf.mxu1 }
 0x19e   : > { %v4195_v5 = vpack.i.bf16 %v673_v4, %v671_v3 }
 0x1a0   : > { %4196 = vrot.lane.b32.xlu1 %v4195_v5, %s4282_s29 }
 0x1a5   : > { %v4423_v6 = vpop.f32.mrf.mxu1 }
 0x1ad   : > { %v4425_v7 = vpop.f32.mrf.mxu1 }
 0x1b5   : > { %v681_v8 = vpop.f32.mrf.mxu1 }
 0x1bd   : > { %v683_v9 = vpop.f32.mrf.mxu1 }
 0x1be   : > { %v4200_v10 = vpack.i.bf16 %v683_v9, %v681_v8 }
 0x1c0   : > { %4201 = vrot.lane.b32.xlu1 %v4200_v10, %s4280_s25 }
 0x1c5   : > { %v686_v11 = vpop.f32.mrf.mxu1 }
 0x1cd   : > { %v688_v12 = vpop.f32.mrf.mxu1 }
 0x1ce   : > { %v4205_v13 = vpack.i.bf16 %v688_v12, %v686_v11 }
 0x1d0   : > { %4206 = vrot.lane.b32.xlu2 %v4205_v13, %s4281_s28 }
 0x1d5   : > { %v691_v14 = vpop.f32.mrf.mxu1 }
 0x1dd   : > { %v693_v18 = vpop.f32.mrf.mxu1 }
 0x1de   : > { %v4210_v19 = vpack.i.bf16 %v693_v18, %v691_v14 }
 0x1e0   : > { %4211 = vrot.lane.b32.xlu2 %v4210_v19, %s4282_s29 }
 0x1e5   : > { %v696_v50 = vpop.f32.mrf.mxu1 }
 0x1ed   : > { %v698_v52 = vpop.f32.mrf.mxu1 }
 0x1ee   : > { %v765_v53 = vpack.c.bf16 %v698_v52, %v696_v50 }
 0x1f2   : > { %v4187_v28 = vpop.permute.xlu0 %4186 }
 0x1f3   : > { %v4189_v34 = vunpack.i.h.bf16 %v4187_v28  ;;  %v4188_v35 = vunpack.i.l.bf16 %v4187_v28 }
 0x1f5   : > { %v751_v39 = vsel %vm749_vm12, %v4416_v59, %v4189_v34  ;;  %v750_v40 = vsel %vm749_vm12, %v4414_v58, %v4188_v35 }
 0x202   : > { %v4192_v32 = vpop.permute.xlu0 %4191 }
 0x203   : > { %v4194_v36 = vunpack.i.h.bf16 %v4192_v32  ;;  %v4193_v37 = vunpack.i.l.bf16 %v4192_v32 }
 0x205   : > { %v752_v44 = vsel %vm619_vm11, %v750_v40, %v4193_v37  ;;  %v753_v45 = vsel %vm619_vm11, %v751_v39, %v4194_v36 }
 0x212   : > { %v4197_v38 = vpop.permute.xlu1 %4196 }
 0x213   : > { %v4199_v41 = vunpack.i.h.bf16 %v4197_v38  ;;  %v4198_v42 = vunpack.i.l.bf16 %v4197_v38 }
 0x215   : > { %v755_v46 = vsel %vm754_vm13, %v752_v44, %v4198_v42  ;;  %v756_v47 = vsel %vm754_vm13, %v753_v45, %v4199_v41 }
 0x216   : > { %v763_v49 = vpack.c.bf16 %v756_v47, %v755_v46 }
 0x218   : > { %921 = vmatmul.bf16.vlgmr.msra.gmra.mxu2 %v763_v49 }
 0x228   : > { %3178 = vmatmul.msk.bf16.vlgmr.msrb.gmra.mxu2 %vm749_vm12, %v765_v53 }
 0x22a   : > { %v4207_v54 = vpop.permute.xlu2 %4206 }
 0x22b   : > { %v4209_v60 = vunpack.i.h.bf16 %v4207_v54  ;;  %v4208_v61 = vunpack.i.l.bf16 %v4207_v54 }
 0x232   : > { %v4202_v55 = vpop.permute.xlu1 %4201 }
 0x233   : > { %v4204_v56 = vunpack.i.h.bf16 %v4202_v55  ;;  %v4203_v57 = vunpack.i.l.bf16 %v4202_v55 }
 0x235   : > { %v758_v58 = vsel %vm749_vm12, %v4425_v7, %v4204_v56  ;;  %v757_v59 = vsel %vm749_vm12, %v4423_v6, %v4203_v57  ;;  %v4283_v6 = vmov 16.0   ;;  %vm1502_vm12 = vcmask 31744  }
 0x236   : > { %v759_v1 = vsel %vm619_vm11, %v757_v59, %v4208_v61  ;;  %v760_v2 = vsel %vm619_vm11, %v758_v58, %v4209_v60  ;;  %4222 = vrcp.f32 %v4283_v6 }
 0x23a   : > { %v4212_v62 = vpop.permute.xlu2 %4211 }
 0x23b   : > { %v4214_v63 = vunpack.i.h.bf16 %v4212_v62  ;;  %v4213_v0 = vunpack.i.l.bf16 %v4212_v62  ;;  %v3972_v62 = vld [vmem:[%s4771_s5] sm:$0xff] }
 0x23c   : > { %v4223_v12 = vpop.eup %4222 }
 0x23d   : > { %v761_v3 = vsel %vm754_vm13, %v759_v1, %v4213_v0  ;;  %v762_v4 = vsel %vm754_vm13, %v760_v2, %v4214_v63  ;;  %v965_v16 = vmul.f32 16.0, %v4223_v12  ;;  %vm969_vm14 = vweird.f32 %v4223_v12  ;;  %v3973_v63 = vld [vmem:[%s4771_s5 + $0x8] sm:$0xff]  ;;  %v1009_v0 = vld [vmem:[%s4771_s5 + $0x10] sm:$0x3] }
 0x23e   : > { %v764_v5 = vpack.c.bf16 %v762_v4, %v761_v3  ;;  %v1020_v1 = vunpack.c.l.b16 %v1009_v0  ;;  %v3981_v3 = vld [vmem:[%s4772_s6 + $0x38] sm:$0xff] }
 0x23f   : > { %v966_v21 = vsub.f32 1.0, %v965_v16  ;;  %v3989_v4 = vld [vmem:[%s4772_s6 + $0x78] sm:$0xff]  ;;  %1377 = vmatpush.bf16.msrb.mxu0 %v3981_v3  ;;  %v3994_v16 = vld [vmem:[%s4772_s6 + $0xa0] sm:$0xff] }
 0x240   : > { %935 = vmatmul.bf16.vlgmr.msra.gmra.mxu3 %v764_v5  ;;  %v1023_v2 = vpack.c.b16 %v1020_v1, %v1020_v1  ;;  %v3997_v5 = vld [vmem:[%s4772_s6 + $0xb8] sm:$0xff]  ;;  %1390 = vmatpush.bf16.msra.mxu2 %v3989_v4 }
 0x241   : > { %v967_v24 = vmul.f32 %v4223_v12, %v966_v21  ;;  %v3976_v21 = vld [vmem:[%s4772_s6 + $0x10] sm:$0xff] }
 0x243   : > { %v968_v27 = vadd.f32 %v4223_v12, %v967_v24 }
 0x245   : > { %v970_v30 = vsel %vm969_vm14, %v4223_v12, %v968_v27  ;;  %v3987_v12 = vld [vmem:[%s4772_s6 + $0x68] sm:$0xff] }
 0x246   : > { %v3975_v27 = vld [vmem:[%s4772_s6 + $0x8] sm:$0xff] }
 0x29b   : > { %v922_v8 = vpop.f32.mrf.mxu2 }
 0x2a3   : > { %v924_v7 = vpop.f32.mrf.mxu2 }
 0x2ab   : > { %v950_v9 = vpop.f32.mrf.mxu2 }
 0x2b3   : > { %v952_v17 = vpop.f32.mrf.mxu2 }
 0x2c3   : > { %v936_v10 = vpop.f32.mrf.mxu3 }
 0x2c4   : > { %v937_v11 = vadd.f32 %v936_v10, %v922_v8  ;;  %v3980_v8 = vld [vmem:[%s4772_s6 + $0x30] sm:$0xff] }
 0x2c5   : > { %1378 = vmatpush.bf16.msrb.mxu0 %v3980_v8 }
 0x2c6   : > { %v951_v14 = vadd.f32 %v950_v9, %v937_v11  ;;  %v3996_v9 = vld [vmem:[%s4772_s6 + $0xb0] sm:$0xff]  ;;  %v3979_v11 = vld [vmem:[%s4772_s6 + $0x28] sm:$0xff] }
 0x2c8   : > { %v955_v19 = vsel %vm619_vm11, %v951_v14, 0.0 }
 0x2c9   : > { %1379 = vmatpush.bf16.msrb.mxu0 %v3979_v11 }
 0x2cb   : > { %v938_v13 = vpop.f32.mrf.mxu3 }
 0x2cc   : > { %v939_v15 = vadd.f32 %v938_v13, %v924_v7  ;;  %v3988_v7 = vld [vmem:[%s4772_s6 + $0x70] sm:$0xff]  ;;  %v3995_v13 = vld [vmem:[%s4772_s6 + $0xa8] sm:$0xff] }
 0x2cd   : > { %1391 = vmatpush.bf16.msra.mxu2 %v3988_v7  ;;  %v4284_v7 = vmov 4.0  }
 0x2ce   : > { %v953_v18 = vadd.f32 %v952_v17, %v939_v15  ;;  %v3986_v15 = vld [vmem:[%s4772_s6 + $0x60] sm:$0xff] }
 0x2d0   : > { %v956_v20 = vsel %vm619_vm11, %v953_v18, 0.0 }
 0x2d1   : > { %v957_v22 = vadd.f32 %v956_v20, %v955_v19  ;;  %1392 = vmatpush.bf16.msra.mxu2 %v3987_v12  ;;  %v3985_v19 = vld [vmem:[%s4772_s6 + $0x58] sm:$0xff] }
 0x2d2   : > { %v3993_v20 = vld [vmem:[%s4772_s6 + $0x98] sm:$0xff] }
 0x2d3   : > { %v958_v23 = vrot.slane %v957_v22, 4 }
 0x2d5   : > { %v959_v25 = vadd.f32 %v958_v23, %v957_v22  ;;  %1393 = vmatpush.bf16.msra.mxu2 %v3986_v15  ;;  %v3984_v22 = vld [vmem:[%s4772_s6 + $0x50] sm:$0xff] }
 0x2d6   : > { %v3992_v23 = vld [vmem:[%s4772_s6 + $0x90] sm:$0xff] }
 0x2d7   : > { %v960_v26 = vrot.slane %v959_v25, 2 }
 0x2d9   : > { %v961_v28 = vadd.f32 %v960_v26, %v959_v25  ;;  %1394 = vmatpush.bf16.msra.mxu2 %v3985_v19 }
 0x2db   : > { %v962_v29 = vrot.slane %v961_v28, 1 }
 0x2dd   : > { %v963_v31 = vadd.f32 %v962_v29, %v961_v28  ;;  %1395 = vmatpush.bf16.msra.mxu2 %v3984_v22  ;;  %v3983_v28 = vld [vmem:[%s4772_s6 + $0x48] sm:$0xff] }
 0x2de   : > { %v3991_v29 = vld [vmem:[%s4772_s6 + $0x88] sm:$0xff] }
 0x2df   : > { %v971_v32 = vmul.f32 %v970_v30, %v963_v31 }
 0x2e1   : > { %v972_v33 = vsub.f32 %v951_v14, %v971_v32  ;;  %v973_v34 = vsub.f32 %v953_v18, %v971_v32  ;;  %v3978_v14 = vld [vmem:[%s4772_s6 + $0x20] sm:$0xff]  ;;  %v3977_v18 = vld [vmem:[%s4772_s6 + $0x18] sm:$0xff]  ;;  %1396 = vmatpush.bf16.msra.mxu2 %v3983_v28 }
 0x2e2   : > { %1380 = vmatpush.bf16.msrb.mxu0 %v3978_v14 }
 0x2e3   : > { %v974_v35 = vmul.f32 %v972_v33, %v972_v33  ;;  %v975_v36 = vmul.f32 %v973_v34, %v973_v34 }
 0x2e5   : > { %v976_v37 = vsel %vm619_vm11, %v974_v35, 0.0  ;;  %v977_v38 = vsel %vm619_vm11, %v975_v36, 0.0  ;;  %v3990_v35 = vld [vmem:[%s4772_s6 + $0x80] sm:$0xff]  ;;  %v4005_v36 = vld [vmem:[%s4772_s6 + $0xf8] sm:$0xff] }
 0x2e6   : > { %v978_v39 = vadd.f32 %v977_v38, %v976_v37  ;;  %1381 = vmatpush.bf16.msrb.mxu0 %v3977_v18  ;;  %v4004_v37 = vld [vmem:[%s4772_s6 + $0xf0] sm:$0xff]  ;;  %v4003_v38 = vld [vmem:[%s4772_s6 + $0xe8] sm:$0xff] }
 0x2e8   : > { %v979_v40 = vrot.slane %v978_v39, 4 }
 0x2ea   : > { %v980_v41 = vadd.f32 %v979_v40, %v978_v39  ;;  %1382 = vmatpush.bf16.msrb.mxu0 %v3976_v21  ;;  %v4002_v39 = vld [vmem:[%s4772_s6 + $0xe0] sm:$0xff]  ;;  %v4001_v40 = vld [vmem:[%s4772_s6 + $0xd8] sm:$0xff] }
 0x2ec   : > { %v981_v42 = vrot.slane %v980_v41, 2 }
 0x2ee   : > { %v982_v43 = vadd.f32 %v981_v42, %v980_v41  ;;  %1383 = vmatpush.bf16.msrb.mxu0 %v3975_v27  ;;  %v4000_v41 = vld [vmem:[%s4772_s6 + $0xd0] sm:$0xff]  ;;  %v3999_v42 = vld [vmem:[%s4772_s6 + $0xc8] sm:$0xff] }
 0x2f0   : > { %v983_v44 = vrot.slane %v982_v43, 1 }
 0x2f2   : > { %v984_v45 = vadd.f32 %v983_v44, %v982_v43  ;;  %v3998_v43 = vld [vmem:[%s4772_s6 + $0xc0] sm:$0xff] }
 0x2f4   : > { %v985_v46 = vmul.f32 %v984_v45, %v970_v30 }
 0x2f6   : > { %v986_v47 = vadd.f32 1e-05, %v985_v46 }
 0x2f8   : > { %4224 = vrsqrt.f32 %v986_v47  ;;  %vm993_vm0 = vweird.f32 %v986_v47 }
 0x2f9   : > { %4226 = vrcp.f32 %v4284_v7 }
 0x2fe   : > { %v4225_v48 = vpop.eup %4224 }
 0x2ff   : > { %v988_v49 = vmul.f32 %v4225_v48, %v986_v47  ;;  %vm994_vm15 = vweird.f32 %v4225_v48 }
 0x300   : > { %vm995_vm1 = vmor %vm993_vm0, %vm994_vm15 }
 0x301   : > { %v989_v50 = vmul.f32 %v4225_v48, %v988_v49 }
 0x303   : > { %v990_v51 = vmul.f32 0.5, %v989_v50 }
 0x305   : > { %v991_v52 = vsub.f32 1.5, %v990_v51 }
 0x307   : > { %v992_v53 = vmul.f32 %v4225_v48, %v991_v52 }
 0x309   : > { %v996_v54 = vsel %vm995_vm1, %v4225_v48, %v992_v53  ;;  %v4009_v53 = vld [vmem:[%s4772_s6 + $0x118] sm:$0xff] }
 0x30a   : > { %v998_v55 = vmul.f32 %v996_v54, %v973_v34  ;;  %v997_v56 = vmul.f32 %v996_v54, %v972_v33  ;;  %v3974_v33 = vld [vmem:[%s4772_s6] sm:$0xff] }
 0x30b   : > { %v3982_v34 = vld [vmem:[%s4772_s6 + $0x40] sm:$0xff]  ;;  %1384 = vmatpush.bf16.msrb.mxu0 %v3974_v33 }
 0x30c   : > { %vm999_vm2 = vcmp.gt.f32.partialorder %v997_v56, 0.0  ;;  %vm1000_vm3 = vcmp.gt.f32.partialorder %v998_v55, 0.0  ;;  %v1001_v57 = vmul.f32 0.2, %v997_v56  ;;  %v1002_v58 = vmul.f32 0.2, %v998_v55  ;;  %1397 = vmatpush.bf16.msra.mxu2 %v3982_v34 }
 0x30e   : > { %v1003_v59 = vsel %vm999_vm2, %v997_v56, %v1001_v57  ;;  %v1004_v60 = vsel %vm1000_vm3, %v998_v55, %v1002_v58  ;;  %v4008_v56 = vld [vmem:[%s4772_s6 + $0x110] sm:$0xff]  ;;  %v4007_v57 = vld [vmem:[%s4772_s6 + $0x108] sm:$0xff] }
 0x30f   : > { %v1010_v61 = vpack.c.bf16 %v1004_v60, %v1003_v59  ;;  %1416 = vmatpush.bf16.msra.mxu0 %v4005_v36  ;;  %v4006_v59 = vld [vmem:[%s4772_s6 + $0x100] sm:$0xff] }
 0x311   : > { %1041 = vmatpush.bf16.msrb.mxu3 %v1010_v61 }
 0x313   : > { %1417 = vmatpush.bf16.msra.mxu0 %v4004_v37 }
 0x314   : > { %3187 = vmatmul.msk.bf16.vlgmr.msrb.gmra.mxu3 %vm1024_vm4, %v3972_v62 }
 0x315   : > { %1403 = vmatpush.bf16.msra.mxu3 %v3997_v5 }
 0x317   : > { %1418 = vmatpush.bf16.msra.mxu0 %v4003_v38 }
 0x319   : > { %1404 = vmatpush.bf16.msra.mxu3 %v3996_v9 }
 0x31b   : > { %1419 = vmatpush.bf16.msra.mxu0 %v4002_v39 }
 0x31d   : > { %1405 = vmatpush.bf16.msra.mxu3 %v3995_v13 }
 0x31f   : > { %1420 = vmatpush.bf16.msra.mxu0 %v4001_v40 }
 0x321   : > { %1406 = vmatpush.bf16.msra.mxu3 %v3994_v16 }
 0x323   : > { %1421 = vmatpush.bf16.msra.mxu0 %v4000_v41 }
 0x324   : > { %3188 = vmatmul.msk.bf16.gmra.mxu3 %vm1024_vm4, %v3973_v63 }
 0x325   : > { %1407 = vmatpush.bf16.msra.mxu3 %v3993_v20 }
 0x327   : > { %1422 = vmatpush.bf16.msra.mxu0 %v3999_v42 }
 0x329   : > { %1408 = vmatpush.bf16.msra.mxu3 %v3992_v23 }
 0x32b   : > { %1423 = vmatpush.bf16.msra.mxu0 %v3998_v43 }
 0x32d   : > { %1409 = vmatpush.bf16.msra.mxu3 %v3991_v29 }
 0x331   : > { %1410 = vmatpush.bf16.msra.mxu3 %v3990_v35 }
 0x334   : > { %3189 = vmatmul.msk.bf16.gmra.mxu3 %vm1024_vm4, %v1023_v2 }
 0x397   : > { %v4530_v10 = vpop.f32.mrf.mxu3 }
 0x398   : > { %v1058_v6 = vrot.slane %v4530_v10, 4 }
 0x39a   : > { %1059 = vrot.lane.b32.xlu0 %v1058_v6, %s4281_s28  ;;  %v4227_v6 = vpop.eup %4226 }
 0x39b   : > { %v1451_v12 = vmul.f32 4.0, %v4227_v6  ;;  %vm1455_vm6 = vweird.f32 %v4227_v6 }
 0x39d   : > { %v1452_v16 = vsub.f32 1.0, %v1451_v12 }
 0x39f   : > { %v1045_v17 = vpop.f32.mrf.mxu3  ;;  %v1453_v19 = vmul.f32 %v4227_v6, %v1452_v16  ;;  %v4021_v16 = vld [vmem:[#allocation3 + $0x44] sm:$0xf0] }
 0x3a0   : > { %v1063_v25 = vrot.slane %v1045_v17, 4 }
 0x3a1   : > { %v1454_v23 = vadd.f32 %v4227_v6, %v1453_v19  ;;  %v3444_v19 = vld [vmem:[#allocation3 + $0xc0] sm:$0xf] }
 0x3a7   : > { %v1048_v24 = vpop.f32.mrf.mxu3 }
 0x3a8   : > { %v1068_v26 = vrot.slane %v1048_v24, 4 }
 0x3aa   : > { %v4215_v30 = vpack.i.bf16 %v1068_v26, %v1063_v25  ;;  %v4633_v26 = vsel %vm1455_vm6, %v4227_v6, %v1454_v23  ;;  %v3788_v6 = vld [vmem:[#allocation3 + $0x370] sm:$0xf]  ;;  %vm2956_vm6 = vcmask 3072  }
 0x3ac   : > { %4216 = vrot.lane.b32.xlu2 %v4215_v30, %s4281_s28 }
 0x3af   : > { %v1050_v31 = vpop.f32.mrf.mxu3 }
 0x3b0   : > { %v1073_v32 = vrot.slane %v1050_v31, 4 }
 0x3b2   : > { %1074 = vrot.lane.b32.xlu1 %v1073_v32, %s4281_s28 }
 0x3b7   : > { %v1053_v54 = vpop.f32.mrf.mxu3 }
 0x3b8   : > { %v1085_v63 = vpack.c.bf16 %v1053_v54, %v1053_v54  ;;  %v4027_v54 = vld [vmem:[#allocation3 + $0x74] sm:$0xf0] }
 0x3bf   : > { %v1055_v58 = vpop.f32.mrf.mxu3 }
 0x3c0   : > { %v3396_v58 = vld [vmem:[#allocation3 + $0x60] sm:$0xf] }
 0x406   : > { %v4217_v44 = vpop.permute.xlu2 %4216 }
 0x407   : > { %v4219_v45 = vunpack.i.h.bf16 %v4217_v44  ;;  %v4218_v46 = vunpack.i.l.bf16 %v4217_v44 }
 0x409   : > { %v1079_v47 = vsel %vm619_vm11, %v1048_v24, %v4219_v45  ;;  %v1078_v48 = vsel %vm619_vm11, %v1045_v17, %v4218_v46 }
 0x40a   : > { %v1083_v49 = vpack.c.bf16 %v1079_v47, %v1079_v47  ;;  %v1082_v50 = vpack.c.bf16 %v1078_v48, %v1078_v48 }
 0x40c   : > { %v1060_v51 = vpop.permute.xlu0 %1059  ;;  %1398 = vmatmul.bf16.vlgmr.msra.gmra.mxu2 %v1082_v50  ;;  %1411 = vmatmul.bf16.vlgmr.msra.gmra.mxu3 %v1083_v49 }
 0x40d   : > { %v1077_v52 = vsel %vm619_vm11, %v4530_v10, %v1060_v51 }
 0x40e   : > { %v1081_v55 = vpack.c.bf16 %v1077_v52, %v1077_v52  ;;  %v4010_v52 = vld [vmem:[%s4773_s7] sm:$0xff] }
 0x410   : > { %1385 = vmatmul.bf16.vlgmr.msrb.gmra.mxu0 %v1081_v55  ;;  %v3468_v55 = vld [vmem:[#allocation3 + $0xf0] sm:$0xf] }
 0x411   : > { %1433 = vmatpush.bf16.msrb.mxu0 %v4009_v53  ;;  %v3404_v53 = vld [vmem:[#allocation3 + $0x70] sm:$0xf] }
 0x415   : > { %1434 = vmatpush.bf16.msrb.mxu0 %v4008_v56  ;;  %v3405_v56 = vor.u32 %v4027_v54, %v3404_v53  ;;  %v3556_v54 = vld [vmem:[#allocation3 + $0x1a0] sm:$0xf] }
 0x417   : > { %2424 = vmatpush.bf16.msrb.mxu3 %v3405_v56  ;;  %v3764_v56 = vld [vmem:[#allocation3 + $0x340] sm:$0xf] }
 0x419   : > { %1435 = vmatpush.bf16.msrb.mxu0 %v4007_v57  ;;  %v4043_v57 = vld [vmem:[#allocation3 + $0xf4] sm:$0xf0] }
 0x41d   : > { %1436 = vmatpush.bf16.msrb.mxu0 %v4006_v59  ;;  %v4025_v59 = vld [vmem:[#allocation3 + $0x64] sm:$0xf0] }
 0x424   : > { %v1075_v60 = vpop.permute.xlu1 %1074 }
 0x425   : > { %v1080_v61 = vsel %vm619_vm11, %v1050_v31, %v1075_v60  ;;  %v3469_v60 = vor.u32 %v4043_v57, %v3468_v55  ;;  %v4065_v55 = vld [vmem:[#allocation3 + $0x1a4] sm:$0xf0]  ;;  %v3420_v57 = vld [vmem:[#allocation3 + $0x90] sm:$0xf] }
 0x426   : > { %v1084_v62 = vpack.c.bf16 %v1080_v61, %v1080_v61  ;;  %v3460_v61 = vld [vmem:[#allocation3 + $0xe0] sm:$0xf] }
 0x428   : > { %1424 = vmatmul.bf16.vlgmr.msra.gmra.mxu0 %v1084_v62  ;;  %v4041_v62 = vld [vmem:[#allocation3 + $0xe4] sm:$0xf0] }
 0x429   : > { %2437 = vmatpush.bf16.msra.mxu0 %v3469_v60 }
 0x438   : > { %3334 = vmatmul.msk.bf16.vlgmr.msrb.gmra.mxu0 %vm619_vm11, %v1085_v63  ;;  %vm1512_vm11 = vcmask 1041408   ;;  %v3397_v63 = vor.u32 %v4025_v59, %v3396_v58  ;;  %v4031_v58 = vld [vmem:[#allocation3 + $0x94] sm:$0xf0]  ;;  %v4117_v59 = vld [vmem:[#allocation3 + $0x344] sm:$0xf0] }
 0x439   : > { %v3765_v60 = vor.u32 %v4117_v59, %v3764_v56 }
 0x43a   : > { %2425 = vmatpush.bf16.msrb.mxu3 %v3397_v63  ;;  %v4013_v63 = vld [vmem:[#allocation3 + $0x4] sm:$0xf0] }
 0x48d   : > { %v1386_v0 = vpop.f32.mrf.mxu0 }
 0x48f   : > { %v1399_v1 = vpop.f32.mrf.mxu2  ;;  %v1412_v2 = vpop.f32.mrf.mxu3 }
 0x490   : > { %v1400_v10 = vadd.f32 %v1399_v1, %v1386_v0  ;;  %v3388_v0 = vld [vmem:[#allocation3 + $0x50] sm:$0xf]  ;;  %v3461_v1 = vor.u32 %v4041_v62, %v3460_v61  ;;  %v3348_v62 = vld [vmem:[#allocation3] sm:$0xf] }
 0x492   : > { %v1413_v11 = vadd.f32 %v1412_v2, %v1400_v10  ;;  %v4023_v2 = vld [vmem:[#allocation3 + $0x54] sm:$0xf0]  ;;  %v4073_v10 = vld [vmem:[#allocation3 + $0x1e4] sm:$0xf0]  ;;  %2438 = vmatpush.bf16.msra.mxu0 %v3461_v1  ;;  %v3548_v1 = vld [vmem:[#allocation3 + $0x190] sm:$0xf] }
 0x495   : > { %v1388_v3 = vpop.f32.mrf.mxu0 }
 0x496   : > { %v3596_v3 = vld [vmem:[#allocation3 + $0x1f0] sm:$0xf] }
 0x497   : > { %v1401_v4 = vpop.f32.mrf.mxu2  ;;  %v1414_v5 = vpop.f32.mrf.mxu3 }
 0x498   : > { %v4075_v4 = vld [vmem:[#allocation3 + $0x1f4] sm:$0xf0]  ;;  %v3452_v5 = vld [vmem:[#allocation3 + $0xd0] sm:$0xf] }
 0x499   : > { %v3597_v7 = vor.u32 %v4075_v4, %v3596_v3  ;;  %v3421_v3 = vor.u32 %v4031_v58, %v3420_v57  ;;  %v4063_v4 = vld [vmem:[#allocation3 + $0x194] sm:$0xf0]  ;;  %v3700_v57 = vld [vmem:[#allocation3 + $0x2c0] sm:$0xf]  ;;  %v4101_v58 = vld [vmem:[#allocation3 + $0x2c4] sm:$0xf0] }
 0x4a5   : > { %v1425_v8 = vpop.f32.mrf.mxu0 }
 0x4a6   : > { %v1426_v13 = vadd.f32 %v1425_v8, %v1413_v11  ;;  %v4039_v8 = vld [vmem:[#allocation3 + $0xd4] sm:$0xf0]  ;;  %v3389_v11 = vor.u32 %v4023_v2, %v3388_v0  ;;  %v3557_v0 = vor.u32 %v4065_v55, %v3556_v54 }
 0x4a7   : > { %v4135_v54 = vld [vmem:[#allocation3 + $0x3d4] sm:$0xf0] }
 0x4a8   : > { %2426 = vmatpush.bf16.msrb.mxu3 %v3389_v11  ;;  %v3724_v11 = vld [vmem:[#allocation3 + $0x2f0] sm:$0xf] }
 0x4ad   : > { %v1427_v9 = vpop.f32.mrf.mxu0 }
 0x4ae   : > { %v3588_v9 = vld [vmem:[#allocation3 + $0x1e0] sm:$0xf] }
 0x4af   : > { %v3589_v12 = vor.u32 %v4073_v10, %v3588_v9  ;;  %v4059_v9 = vld [vmem:[#allocation3 + $0x174] sm:$0xf0]  ;;  %v3412_v10 = vld [vmem:[#allocation3 + $0x80] sm:$0xf] }
 0x4b5   : > { %v1438_v14 = vpop.f32.mrf.mxu0 }
 0x4b6   : > { %v1439_v15 = vadd.f32 %v1438_v14, %v1426_v13  ;;  %v4123_v13 = vld [vmem:[#allocation3 + $0x374] sm:$0xf0]  ;;  %v3453_v14 = vor.u32 %v4039_v8, %v3452_v5  ;;  %v3756_v5 = vld [vmem:[#allocation3 + $0x330] sm:$0xf] }
 0x4b7   : > { %v4115_v8 = vld [vmem:[#allocation3 + $0x334] sm:$0xf0] }
 0x4b8   : > { %v1443_v17 = vsel %vm1442_vm5, %v1439_v15, 0.0  ;;  %2439 = vmatpush.bf16.msra.mxu0 %v3453_v14  ;;  %v4107_v14 = vld [vmem:[#allocation3 + $0x2f4] sm:$0xf0] }
 0x4b9   : > { %v1444_v18 = vrot.slane %v1443_v17, 4 }
 0x4bb   : > { %v1445_v20 = vadd.f32 %v1444_v18, %v1443_v17  ;;  %v3789_v17 = vor.u32 %v4123_v13, %v3788_v6  ;;  %v3580_v18 = vld [vmem:[#allocation3 + $0x1d0] sm:$0xf]  ;;  %v4029_v6 = vld [vmem:[#allocation3 + $0x84] sm:$0xf0]  ;;  %v3349_v13 = vor.u32 %v4013_v63, %v3348_v62  ;;  %v4051_v63 = vld [vmem:[#allocation3 + $0x134] sm:$0xf0] }
 0x4bd   : > { %v1446_v21 = vrot.slane %v1445_v20, 2  ;;  %v1440_v22 = vpop.f32.mrf.mxu0  ;;  %2502 = vmatpush.bf16.msrb.mxu1 %v3789_v17  ;;  %v4113_v17 = vld [vmem:[#allocation3 + $0x324] sm:$0xf0] }
 0x4be   : > { %v4011_v22 = vld [vmem:[%s4773_s7 + $0x8] sm:$0xff] }
 0x4bf   : > { %v1447_v24 = vadd.f32 %v1446_v21, %v1445_v20  ;;  %v4037_v20 = vld [vmem:[#allocation3 + $0xc4] sm:$0xf0]  ;;  %v4071_v21 = vld [vmem:[#allocation3 + $0x1d4] sm:$0xf0] }
 0x4c1   : > { %v1448_v25 = vrot.slane %v1447_v24, 1 }
 0x4c3   : > { %v1449_v27 = vadd.f32 %v1448_v25, %v1447_v24  ;;  %v3372_v24 = vld [vmem:[#allocation3 + $0x30] sm:$0xf]  ;;  %v3581_v25 = vor.u32 %v4071_v21, %v3580_v18  ;;  %v3540_v21 = vld [vmem:[#allocation3 + $0x180] sm:$0xf] }
 0x4c5   : > { %v1457_v28 = vmul.f32 %v4633_v26, %v1449_v27  ;;  %v3445_v27 = vor.u32 %v4037_v20, %v3444_v19  ;;  %v3524_v20 = vld [vmem:[#allocation3 + $0x160] sm:$0xf] }
 0x4c7   : > { %v1458_v29 = vsub.f32 %v1439_v15, %v1457_v28  ;;  %v3380_v15 = vld [vmem:[#allocation3 + $0x40] sm:$0xf]  ;;  %v4019_v28 = vld [vmem:[#allocation3 + $0x34] sm:$0xf0]  ;;  %2440 = vmatpush.bf16.msra.mxu0 %v3445_v27 }
 0x4c8   : > { %v3381_v23 = vor.u32 %v4021_v16, %v3380_v15  ;;  %v3549_v15 = vor.u32 %v4063_v4, %v3548_v1  ;;  %v3748_v16 = vld [vmem:[#allocation3 + $0x320] sm:$0xf]  ;;  %v4139_v27 = vld [vmem:[#allocation3 + $0x3f4] sm:$0xf0]  ;;  %v4133_v1 = vld [vmem:[#allocation3 + $0x3c4] sm:$0xf0] }
 0x4c9   : > { %v1459_v30 = vmul.f32 %v1458_v29, %v1458_v29  ;;  %v4099_v4 = vld [vmem:[#allocation3 + $0x2b4] sm:$0xf0] }
 0x4ca   : > { %2427 = vmatpush.bf16.msrb.mxu3 %v3381_v23  ;;  %v3413_v23 = vor.u32 %v4029_v6, %v3412_v10  ;;  %v3684_v6 = vld [vmem:[#allocation3 + $0x2a0] sm:$0xf] }
 0x4cb   : > { %v1460_v31 = vsel %vm1442_vm5, %v1459_v30, 0.0  ;;  %v4069_v30 = vld [vmem:[#allocation3 + $0x1c4] sm:$0xf0] }
 0x4cc   : > { %v1461_v32 = vrot.slane %v1460_v31, 4 }
 0x4ce   : > { %v1462_v33 = vadd.f32 %v1461_v32, %v1460_v31  ;;  %v3436_v31 = vld [vmem:[#allocation3 + $0xb0] sm:$0xf]  ;;  %v4035_v32 = vld [vmem:[#allocation3 + $0xb4] sm:$0xf0] }
 0x4d0   : > { %v1463_v34 = vrot.slane %v1462_v33, 2 }
 0x4d2   : > { %v1464_v35 = vadd.f32 %v1463_v34, %v1462_v33  ;;  %v3780_v33 = vld [vmem:[#allocation3 + $0x360] sm:$0xf]  ;;  %v3373_v34 = vor.u32 %v4019_v28, %v3372_v24  ;;  %v4057_v24 = vld [vmem:[#allocation3 + $0x164] sm:$0xf0]  ;;  %v3725_v28 = vor.u32 %v4107_v14, %v3724_v11  ;;  %v4047_v14 = vld [vmem:[#allocation3 + $0x114] sm:$0xf0] }
 0x4d3   : > { %v4097_v11 = vld [vmem:[#allocation3 + $0x2a4] sm:$0xf0] }
 0x4d4   : > { %v1465_v36 = vrot.slane %v1464_v35, 1  ;;  %2428 = vmatpush.bf16.msrb.mxu3 %v3373_v34  ;;  %v4111_v34 = vld [vmem:[#allocation3 + $0x314] sm:$0xf0] }
 0x4d6   : > { %v1466_v37 = vadd.f32 %v1465_v36, %v1464_v35  ;;  %v3364_v35 = vld [vmem:[#allocation3 + $0x20] sm:$0xf] }
 0x4d8   : > { %v1467_v38 = vmul.f32 %v1466_v37, %v4633_v26  ;;  %v4121_v37 = vld [vmem:[#allocation3 + $0x364] sm:$0xf0] }
 0x4da   : > { %v1468_v39 = vadd.f32 1e-05, %v1467_v38  ;;  %v3437_v38 = vor.u32 %v4035_v32, %v3436_v31  ;;  %v4105_v31 = vld [vmem:[#allocation3 + $0x2e4] sm:$0xf0] }
 0x4dc   : > { %4228 = vrsqrt.f32 %v1468_v39  ;;  %vm1475_vm8 = vweird.f32 %v1468_v39  ;;  %2441 = vmatpush.bf16.msra.mxu0 %v3437_v38  ;;  %v4055_v38 = vld [vmem:[#allocation3 + $0x154] sm:$0xf0] }
 0x4e2   : > { %v4229_v40 = vpop.eup %4228 }
 0x4e3   : > { %v1470_v41 = vmul.f32 %v4229_v40, %v1468_v39  ;;  %vm1476_vm7 = vweird.f32 %v4229_v40  ;;  %v4017_v39 = vld [vmem:[#allocation3 + $0x24] sm:$0xf0] }
 0x4e4   : > { %vm1477_vm9 = vmor %vm1475_vm8, %vm1476_vm7 }
 0x4e5   : > { %v1471_v42 = vmul.f32 %v4229_v40, %v1470_v41  ;;  %v4067_v41 = vld [vmem:[#allocation3 + $0x1b4] sm:$0xf0] }
 0x4e7   : > { %v1472_v43 = vmul.f32 0.5, %v1471_v42  ;;  %v3781_v42 = vor.u32 %v4121_v37, %v3780_v33  ;;  %v3740_v33 = vld [vmem:[#allocation3 + $0x310] sm:$0xf] }
 0x4e9   : > { %v1473_v44 = vsub.f32 1.5, %v1472_v43  ;;  %v3428_v43 = vld [vmem:[#allocation3 + $0xa0] sm:$0xf]  ;;  %2503 = vmatpush.bf16.msrb.mxu1 %v3781_v42  ;;  %v3708_v42 = vld [vmem:[#allocation3 + $0x2d0] sm:$0xf] }
 0x4eb   : > { %v1474_v45 = vmul.f32 %v4229_v40, %v1473_v44  ;;  %v4033_v44 = vld [vmem:[#allocation3 + $0xa4] sm:$0xf0] }
 0x4ec   : > { %v3429_v53 = vor.u32 %v4033_v44, %v3428_v43  ;;  %v3741_v43 = vor.u32 %v4111_v34, %v3740_v33  ;;  %v4103_v44 = vld [vmem:[#allocation3 + $0x2d4] sm:$0xf0]  ;;  %v4129_v34 = vld [vmem:[#allocation3 + $0x3a4] sm:$0xf0] }
 0x4ed   : > { %v1478_v46 = vsel %vm1477_vm9, %v4229_v40, %v1474_v45  ;;  %v3564_v40 = vld [vmem:[#allocation3 + $0x1b0] sm:$0xf]  ;;  %v3709_v55 = vor.u32 %v4103_v44, %v3708_v42  ;;  %v4036_v42 = vld [vmem:[#allocation3 + $0xc4] sm:$0xf]  ;;  %v3796_v44 = vld [vmem:[#allocation3 + $0x380] sm:$0xf] }
 0x4ee   : > { %v1479_v47 = vmul.f32 %v1478_v46, %v1458_v29  ;;  %v3572_v29 = vld [vmem:[#allocation3 + $0x1c0] sm:$0xf]  ;;  %v3772_v45 = vld [vmem:[#allocation3 + $0x350] sm:$0xf]  ;;  %v4119_v46 = vld [vmem:[#allocation3 + $0x354] sm:$0xf0]  ;;  %2442 = vmatpush.bf16.msra.mxu0 %v3429_v53 }
 0x4ef   : > { %v3573_v36 = vor.u32 %v4069_v30, %v3572_v29  ;;  %v3716_v29 = vld [vmem:[#allocation3 + $0x2e0] sm:$0xf]  ;;  %v3749_v30 = vor.u32 %v4113_v17, %v3748_v16  ;;  %v3836_v53 = vld [vmem:[#allocation3 + $0x3d0] sm:$0xf] }
 0x4f0   : > { %v1481_v48 = vmul.f32 0.2, %v1479_v47  ;;  %vm1480_vm10 = vcmp.gt.f32.partialorder %v1479_v47, 0.0  ;;  %v3837_v62 = vor.u32 %v4135_v54, %v3836_v53  ;;  %v3676_v17 = vld [vmem:[#allocation3 + $0x290] sm:$0xf] }
 0x4f1   : > { %v4030_v54 = vld [vmem:[#allocation3 + $0x94] sm:$0xf] }
 0x4f2   : > { %v1482_v49 = vsel %vm1480_vm10, %v1479_v47, %v1481_v48  ;;  %v1487_v47 = vld [vmem:[%s4773_s7 + $0x10] sm:$0x3]  ;;  %v3365_v48 = vor.u32 %v4017_v39, %v3364_v35  ;;  %2443 = vmatpush.bf16.msra.mxu0 %v3421_v3  ;;  %v3525_v35 = vor.u32 %v4057_v24, %v3524_v20  ;;  %v3844_v39 = vld [vmem:[#allocation3 + $0x3e0] sm:$0xf]  ;;  %v4045_v24 = vld [vmem:[#allocation3 + $0x104] sm:$0xf0] }
 0x4f3   : > { %v1488_v50 = vpack.c.bf16 %v1482_v49, %v1482_v49  ;;  %v3356_v49 = vld [vmem:[#allocation3 + $0x10] sm:$0xf]  ;;  %v1498_v2 = vunpack.c.l.b16 %v1487_v47 }
 0x4f4   : > { %2429 = vmatpush.bf16.msrb.mxu3 %v3365_v48  ;;  %v3508_v48 = vld [vmem:[#allocation3 + $0x140] sm:$0xf]  ;;  %v3692_v3 = vld [vmem:[#allocation3 + $0x2b0] sm:$0xf] }
 0x4f5   : > { %v1514_v51 = vsel %vm1512_vm11, %v1488_v50, 0  ;;  %v4015_v50 = vld [vmem:[#allocation3 + $0x14] sm:$0xf0]  ;;  %v1501_v18 = vpack.c.b16 %v1498_v2, %v1498_v2  ;;  %v3701_v2 = vor.u32 %v4101_v58, %v3700_v57  ;;  %v3693_v10 = vor.u32 %v4099_v4, %v3692_v3  ;;  %v4028_v57 = vld [vmem:[#allocation3 + $0x84] sm:$0xf] }
 0x4f6   : > { %1523 = vmatpush.bf16.msrb.mxu2 %v1514_v51  ;;  %v3565_v51 = vor.u32 %v4067_v41, %v3564_v40  ;;  %v3357_v61 = vor.u32 %v4015_v50, %v3356_v49  ;;  %2444 = vmatpush.bf16.msra.mxu0 %v3413_v23  ;;  %v4137_v40 = vld [vmem:[#allocation3 + $0x3e4] sm:$0xf0]  ;;  %v3717_v41 = vor.u32 %v4105_v31, %v3716_v29  ;;  %v4042_v50 = vld [vmem:[#allocation3 + $0xf4] sm:$0xf]  ;;  %v3476_v23 = vld [vmem:[#allocation3 + $0x100] sm:$0xf] }
 0x4f7   : > { %v3845_v49 = vor.u32 %v4137_v40, %v3844_v39  ;;  %v4093_v31 = vld [vmem:[#allocation3 + $0x284] sm:$0xf0]  ;;  %v4127_v39 = vld [vmem:[#allocation3 + $0x394] sm:$0xf0]  ;;  %v3414_v58 = vld [vmem:[#allocation3 + $0x88] sm:$0xf0] }
 0x4f8   : > { %2430 = vmatpush.bf16.msrb.mxu3 %v3357_v61  ;;  %v3500_v61 = vld [vmem:[#allocation3 + $0x130] sm:$0xf]  ;;  %v3652_v4 = vld [vmem:[#allocation3 + $0x260] sm:$0xf] }
 0x4f9   : > { %3343 = vmatmul.msk.bf16.vlgmr.msrb.gmra.mxu2 %vm1502_vm12, %v4010_v52  ;;  %v3773_v52 = vor.u32 %v4119_v46, %v3772_v45  ;;  %v3732_v45 = vld [vmem:[#allocation3 + $0x300] sm:$0xf]  ;;  %v4109_v46 = vld [vmem:[#allocation3 + $0x304] sm:$0xf0] }
 0x4fa   : > { %2463 = vmatpush.bf16.msra.mxu2 %v3597_v7  ;;  %v3532_v7 = vld [vmem:[#allocation3 + $0x170] sm:$0xf]  ;;  %2489 = vmatpush.bf16.msrb.mxu0 %v3725_v28  ;;  %v3733_v56 = vor.u32 %v4109_v46, %v3732_v45  ;;  %v3462_v28 = vld [vmem:[#allocation3 + $0xe8] sm:$0xf0]  ;;  %v4125_v45 = vld [vmem:[#allocation3 + $0x384] sm:$0xf0] }
 0x4fb   : > { %2504 = vmatpush.bf16.msrb.mxu1 %v3773_v52  ;;  %v3533_v19 = vor.u32 %v4059_v9, %v3532_v7  ;;  %v4053_v52 = vld [vmem:[#allocation3 + $0x144] sm:$0xf0]  ;;  %v3492_v7 = vld [vmem:[#allocation3 + $0x120] sm:$0xf] }
 0x4fc   : > { %2431 = vmatpush.bf16.msrb.mxu3 %v3349_v13  ;;  %v4049_v9 = vld [vmem:[#allocation3 + $0x124] sm:$0xf0]  ;;  %v3484_v13 = vld [vmem:[#allocation3 + $0x110] sm:$0xf] }
 0x4fd   : > { %v3485_v16 = vor.u32 %v4047_v14, %v3484_v13  ;;  %v4022_v14 = vld [vmem:[#allocation3 + $0x54] sm:$0xf] }
 0x4fe   : > { %2464 = vmatpush.bf16.msra.mxu2 %v3589_v12  ;;  %v3757_v12 = vor.u32 %v4115_v8, %v3756_v5  ;;  %2490 = vmatpush.bf16.msrb.mxu0 %v3717_v41  ;;  %v3501_v5 = vor.u32 %v4051_v63, %v3500_v61  ;;  %v4091_v61 = vld [vmem:[#allocation3 + $0x274] sm:$0xf0]  ;;  %v3406_v63 = vld [vmem:[#allocation3 + $0x78] sm:$0xf0] }
 0x4ff   : > { %2505 = vmatpush.bf16.msrb.mxu1 %v3765_v60  ;;  %v3509_v60 = vor.u32 %v4053_v52, %v3508_v48  ;;  %v4034_v48 = vld [vmem:[#allocation3 + $0xb4] sm:$0xf]  ;;  %v3430_v52 = vld [vmem:[#allocation3 + $0xa8] sm:$0xf0] }
 0x500   : > { %2450 = vmatpush.bf16.msra.mxu3 %v3533_v19  ;;  %v3820_v19 = vld [vmem:[#allocation3 + $0x3b0] sm:$0xf] }
 0x502   : > { %2465 = vmatpush.bf16.msra.mxu2 %v3581_v25  ;;  %v3852_v25 = vld [vmem:[#allocation3 + $0x3f0] sm:$0xf]  ;;  %2491 = vmatpush.bf16.msrb.mxu0 %v3709_v55  ;;  %v3422_v55 = vld [vmem:[#allocation3 + $0x98] sm:$0xf0] }
 0x503   : > { %2506 = vmatpush.bf16.msrb.mxu1 %v3757_v12  ;;  %v3853_v37 = vor.u32 %v4139_v27, %v3852_v25  ;;  %v3493_v12 = vor.u32 %v4049_v9, %v3492_v7  ;;  %v3477_v25 = vor.u32 %v4045_v24, %v3476_v23  ;;  %v4040_v27 = vld [vmem:[#allocation3 + $0xe4] sm:$0xf] }
 0x504   : > { %2451 = vmatpush.bf16.msra.mxu3 %v3525_v35  ;;  %v3465_v29 = vor.u32 %v4040_v27, %v3462_v28  ;;  %v4024_v9 = vld [vmem:[#allocation3 + $0x64] sm:$0xf]  ;;  %v3382_v28 = vld [vmem:[#allocation3 + $0x48] sm:$0xf0] }
 0x506   : > { %2466 = vmatpush.bf16.msra.mxu2 %v3573_v36  ;;  %v3516_v36 = vld [vmem:[#allocation3 + $0x150] sm:$0xf]  ;;  %2492 = vmatpush.bf16.msrb.mxu0 %v3701_v2 }
 0x507   : > { %2507 = vmatpush.bf16.msrb.mxu1 %v3749_v30  ;;  %v3517_v47 = vor.u32 %v4055_v38, %v3516_v36  ;;  %v3668_v30 = vld [vmem:[#allocation3 + $0x280] sm:$0xf]  ;;  %v4038_v36 = vld [vmem:[#allocation3 + $0xd4] sm:$0xf]  ;;  %v3804_v38 = vld [vmem:[#allocation3 + $0x390] sm:$0xf] }
 0x508   : > { %v3669_v33 = vor.u32 %v4093_v31, %v3668_v30  ;;  %v3805_v41 = vor.u32 %v4127_v39, %v3804_v38  ;;  %v3526_v30 = vld [vmem:[#allocation3 + $0x168] sm:$0xf0]  ;;  %v4054_v38 = vld [vmem:[#allocation3 + $0x154] sm:$0xf]  ;;  %v3518_v39 = vld [vmem:[#allocation3 + $0x158] sm:$0xf0] }
 0x509   : > { %3344 = vmatmul.msk.bf16.gmra.mxu2 %vm1502_vm12, %v4011_v22  ;;  %v4061_v22 = vld [vmem:[#allocation3 + $0x184] sm:$0xf0]  ;;  %2452 = vmatpush.bf16.msra.mxu3 %v3517_v47  ;;  %v3797_v47 = vor.u32 %v4125_v45, %v3796_v44  ;;  %v3620_v44 = vld [vmem:[#allocation3 + $0x220] sm:$0xf] }
 0x50a   : > { %2467 = vmatpush.bf16.msra.mxu2 %v3565_v51  ;;  %v3541_v32 = vor.u32 %v4061_v22, %v3540_v21  ;;  %v3470_v51 = vld [vmem:[#allocation3 + $0xf8] sm:$0xf0]  ;;  %2493 = vmatpush.bf16.msrb.mxu0 %v3693_v10  ;;  %v4131_v21 = vld [vmem:[#allocation3 + $0x3b4] sm:$0xf0]  ;;  %v3398_v10 = vld [vmem:[#allocation3 + $0x68] sm:$0xf0] }
 0x50b   : > { %2508 = vmatpush.bf16.msrb.mxu1 %v3741_v43  ;;  %v3473_v59 = vor.u32 %v4042_v50, %v3470_v51  ;;  %v3821_v22 = vor.u32 %v4131_v21, %v3820_v19  ;;  %v3446_v43 = vld [vmem:[#allocation3 + $0xc8] sm:$0xf0]  ;;  %v4032_v51 = vld [vmem:[#allocation3 + $0xa4] sm:$0xf]  ;;  %v3401_v13 = vor.u32 %v4024_v9, %v3398_v10  ;;  %v3636_v21 = vld [vmem:[#allocation3 + $0x240] sm:$0xf] }
 0x50c   : > { %v3449_v46 = vor.u32 %v4036_v42, %v3446_v43  ;;  %v3433_v53 = vor.u32 %v4032_v51, %v3430_v52  ;;  %v4081_v45 = vld [vmem:[#allocation3 + $0x224] sm:$0xf0]  ;;  %v4052_v51 = vld [vmem:[#allocation3 + $0x144] sm:$0xf]  ;;  %v3510_v52 = vld [vmem:[#allocation3 + $0x148] sm:$0xf0] }
 0x50d   : > { %2453 = vmatpush.bf16.msra.mxu3 %v3509_v60  ;;  %v3660_v60 = vld [vmem:[#allocation3 + $0x270] sm:$0xf]  ;;  %v4104_v10 = vld [vmem:[#allocation3 + $0x2e4] sm:$0xf] }
 0x50e   : > { %2468 = vmatpush.bf16.msra.mxu2 %v3557_v0  ;;  %v3828_v0 = vld [vmem:[#allocation3 + $0x3c0] sm:$0xf] }
 0x50f   : > { %2509 = vmatpush.bf16.msrb.mxu1 %v3733_v56  ;;  %v3829_v8 = vor.u32 %v4133_v1, %v3828_v0  ;;  %v3425_v56 = vor.u32 %v4030_v54, %v3422_v55  ;;  %v3661_v1 = vor.u32 %v4091_v61, %v3660_v60  ;;  %v3612_v54 = vld [vmem:[#allocation3 + $0x210] sm:$0xf]  ;;  %v4079_v55 = vld [vmem:[#allocation3 + $0x214] sm:$0xf0]  ;;  %v4014_v60 = vld [vmem:[#allocation3 + $0x14] sm:$0xf] }
 0x510   : > { %v3358_v61 = vld [vmem:[#allocation3 + $0x18] sm:$0xf0] }
 0x511   : > { %2454 = vmatpush.bf16.msra.mxu3 %v3501_v5  ;;  %v4089_v5 = vld [vmem:[#allocation3 + $0x264] sm:$0xf0] }
 0x512   : > { %2469 = vmatpush.bf16.msra.mxu2 %v3549_v15  ;;  %v3685_v15 = vor.u32 %v4097_v11, %v3684_v6  ;;  %v3653_v6 = vor.u32 %v4089_v5, %v3652_v4  ;;  %v3644_v11 = vld [vmem:[#allocation3 + $0x250] sm:$0xf]  ;;  %v3604_v4 = vld [vmem:[#allocation3 + $0x200] sm:$0xf]  ;;  %v4077_v5 = vld [vmem:[#allocation3 + $0x204] sm:$0xf0] }
 0x513   : > { %2554 = vmatpush.bf16.msra.mxu1 %v3473_v59  ;;  %v3417_v59 = vor.u32 %v4028_v57, %v3414_v58  ;;  %v3726_v57 = vld [vmem:[#allocation3 + $0x2f8] sm:$0xf0] }
 0x514   : > { %2494 = vmatpush.bf16.msrb.mxu0 %v3685_v15  ;;  %v3390_v15 = vld [vmem:[#allocation3 + $0x58] sm:$0xf0] }
 0x515   : > { %2455 = vmatpush.bf16.msra.mxu3 %v3493_v12  ;;  %v4087_v12 = vld [vmem:[#allocation3 + $0x254] sm:$0xf0]  ;;  %v3393_v23 = vor.u32 %v4022_v14, %v3390_v15  ;;  %v4012_v15 = vld [vmem:[#allocation3 + $0x4] sm:$0xf] }
 0x516   : > { %2470 = vmatpush.bf16.msra.mxu2 %v3541_v32  ;;  %v3812_v32 = vld [vmem:[#allocation3 + $0x3a0] sm:$0xf]  ;;  %v3645_v19 = vor.u32 %v4087_v12, %v3644_v11  ;;  %v3361_v11 = vor.u32 %v4014_v60, %v3358_v61  ;;  %v4155_v14 = vld [vmem:[#allocation3 + $0x474] sm:$0xf0]  ;;  %v4149_v60 = vld [vmem:[#allocation3 + $0x444] sm:$0xf0] }
 0x517   : > { %2555 = vmatpush.bf16.msra.mxu1 %v3465_v29  ;;  %v3813_v35 = vor.u32 %v4129_v34, %v3812_v32  ;;  %v4056_v29 = vld [vmem:[#allocation3 + $0x164] sm:$0xf]  ;;  %v3628_v32 = vld [vmem:[#allocation3 + $0x230] sm:$0xf]  ;;  %v4098_v61 = vld [vmem:[#allocation3 + $0x2b4] sm:$0xf] }
 0x519   : > { %3345 = vmatmul.msk.bf16.gmra.mxu2 %vm1502_vm12, %v1501_v18  ;;  %2456 = vmatpush.bf16.msra.mxu3 %v3485_v16  ;;  %v4095_v18 = vld [vmem:[#allocation3 + $0x294] sm:$0xf0]  ;;  %v4058_v16 = vld [vmem:[#allocation3 + $0x174] sm:$0xf] }
 0x51a   : > { %2515 = vmatpush.bf16.msrb.mxu2 %v3853_v37  ;;  %v3677_v20 = vor.u32 %v4095_v18, %v3676_v17  ;;  %v3454_v37 = vld [vmem:[#allocation3 + $0xd8] sm:$0xf0] }
 0x51b   : > { %v3457_v40 = vor.u32 %v4038_v36, %v3454_v37  ;;  %v3534_v17 = vld [vmem:[#allocation3 + $0x178] sm:$0xf0]  ;;  %v4018_v36 = vld [vmem:[#allocation3 + $0x34] sm:$0xf] }
 0x51c   : > { %2495 = vmatpush.bf16.msrb.mxu0 %v3677_v20  ;;  %v3537_v24 = vor.u32 %v4058_v16, %v3534_v17  ;;  %v3374_v37 = vld [vmem:[#allocation3 + $0x38] sm:$0xf0]  ;;  %v3350_v17 = vld [vmem:[#allocation3 + $0x8] sm:$0xf0] }
 0x51d   : > { %2457 = vmatpush.bf16.msra.mxu3 %v3477_v25  ;;  %2556 = vmatpush.bf16.msra.mxu1 %v3457_v40  ;;  %v4020_v25 = vld [vmem:[#allocation3 + $0x44] sm:$0xf] }
 0x51e   : > { %2516 = vmatpush.bf16.msrb.mxu2 %v3845_v49  ;;  %v3438_v49 = vld [vmem:[#allocation3 + $0xb8] sm:$0xf0]  ;;  %v3385_v34 = vor.u32 %v4020_v25, %v3382_v28  ;;  %v4102_v25 = vld [vmem:[#allocation3 + $0x2d4] sm:$0xf] }
 0x51f   : > { %v3441_v50 = vor.u32 %v4034_v48, %v3438_v49  ;;  %v4016_v48 = vld [vmem:[#allocation3 + $0x24] sm:$0xf]  ;;  %v3710_v28 = vld [vmem:[#allocation3 + $0x2d8] sm:$0xf0] }
 0x520   : > { %2496 = vmatpush.bf16.msrb.mxu0 %v3669_v33  ;;  %v4083_v33 = vld [vmem:[#allocation3 + $0x234] sm:$0xf0] }
 0x521   : > { %2557 = vmatpush.bf16.msra.mxu1 %v3449_v46  ;;  %v3377_v46 = vor.u32 %v4018_v36, %v3374_v37  ;;  %v3486_v36 = vld [vmem:[#allocation3 + $0x118] sm:$0xf0]  ;;  %v3713_v37 = vor.u32 %v4102_v25, %v3710_v28  ;;  %v4094_v25 = vld [vmem:[#allocation3 + $0x294] sm:$0xf] }
 0x522   : > { %2517 = vmatpush.bf16.msrb.mxu2 %v3837_v62  ;;  %v4026_v62 = vld [vmem:[#allocation3 + $0x74] sm:$0xf]  ;;  %v3678_v28 = vld [vmem:[#allocation3 + $0x298] sm:$0xf0] }
 0x525   : > { %2558 = vmatpush.bf16.msra.mxu1 %v3441_v50  ;;  %v3366_v50 = vld [vmem:[#allocation3 + $0x28] sm:$0xf0] }
 0x526   : > { %2518 = vmatpush.bf16.msrb.mxu2 %v3829_v8  ;;  %v3409_v8 = vor.u32 %v4026_v62, %v3406_v63  ;;  %v3369_v58 = vor.u32 %v4016_v48, %v3366_v50  ;;  %v4050_v62 = vld [vmem:[#allocation3 + $0x134] sm:$0xf]  ;;  %v3502_v63 = vld [vmem:[#allocation3 + $0x138] sm:$0xf0]  ;;  %v4044_v50 = vld [vmem:[#allocation3 + $0x104] sm:$0xf] }
 0x527   : > { %v3505_v12 = vor.u32 %v4050_v62, %v3502_v63  ;;  %v3694_v62 = vld [vmem:[#allocation3 + $0x2b8] sm:$0xf0] }
 0x529   : > { %2559 = vmatpush.bf16.msra.mxu1 %v3433_v53  ;;  %v3621_v53 = vor.u32 %v4081_v45, %v3620_v44  ;;  %v4100_v44 = vld [vmem:[#allocation3 + $0x2c4] sm:$0xf]  ;;  %v3702_v45 = vld [vmem:[#allocation3 + $0x2c8] sm:$0xf0] }
 0x52a   : > { %2519 = vmatpush.bf16.msrb.mxu2 %v3821_v22  ;;  %v4085_v22 = vld [vmem:[#allocation3 + $0x244] sm:$0xf0] }
 0x52b   : > { %v3637_v31 = vor.u32 %v4085_v22, %v3636_v21  ;;  %v4090_v22 = vld [vmem:[#allocation3 + $0x274] sm:$0xf] }
 0x52d   : > { %2560 = vmatpush.bf16.msra.mxu1 %v3425_v56  ;;  %v4106_v56 = vld [vmem:[#allocation3 + $0x2f4] sm:$0xf] }
 0x52e   : > { %2520 = vmatpush.bf16.msrb.mxu2 %v3813_v35  ;;  %v3529_v35 = vor.u32 %v4056_v29, %v3526_v30  ;;  %v3353_v29 = vor.u32 %v4012_v15, %v3350_v17  ;;  %v4082_v17 = vld [vmem:[#allocation3 + $0x234] sm:$0xf] }
 0x531   : > { %2561 = vmatpush.bf16.msra.mxu1 %v3417_v59  ;;  %v3513_v59 = vor.u32 %v4052_v51, %v3510_v52  ;;  %v3478_v51 = vld [vmem:[#allocation3 + $0x108] sm:$0xf0]  ;;  %v4086_v52 = vld [vmem:[#allocation3 + $0x254] sm:$0xf] }
 0x532   : > { %2521 = vmatpush.bf16.msrb.mxu2 %v3805_v41  ;;  %v3629_v41 = vor.u32 %v4083_v33, %v3628_v32  ;;  %v4153_v32 = vld [vmem:[#allocation3 + $0x464] sm:$0xf0] }
 0x536   : > { %2522 = vmatpush.bf16.msrb.mxu2 %v3797_v47  ;;  %v3521_v47 = vor.u32 %v4054_v38, %v3518_v39  ;;  %v4088_v38 = vld [vmem:[#allocation3 + $0x264] sm:$0xf]  ;;  %v3654_v39 = vld [vmem:[#allocation3 + $0x268] sm:$0xf0] }
 0x537   : > { %v3657_v48 = vor.u32 %v4088_v38, %v3654_v39  ;;  %v4143_v38 = vld [vmem:[#allocation3 + $0x414] sm:$0xf0]  ;;  %v4092_v39 = vld [vmem:[#allocation3 + $0x284] sm:$0xf] }
 0x57c   : > { %v1525_v0 = vpop.f32.mrf.mxu2 }
 0x57d   : > { %v1540_v2 = vrot.slane %v1525_v0, 4  ;;  %v4651_v3 = vpack.c.bf16 %v1525_v0, %v1525_v0 }
 0x57f   : > { %v4653_v7 = vpack.c.bf16 %v1540_v2, %v1540_v2  ;;  %2432 = vmatmul.bf16.vlgmr.msrb.gmra.mxu3 %v4651_v3  ;;  %v3729_v2 = vor.u32 %v4106_v56, %v3726_v57  ;;  %v3790_v56 = vld [vmem:[#allocation3 + $0x378] sm:$0xf0] }
 0x580   : > { %2476 = vmatpush.bf16.msrb.mxu3 %v3661_v1  ;;  %v3613_v1 = vor.u32 %v4079_v55, %v3612_v54  ;;  %v3646_v54 = vld [vmem:[#allocation3 + $0x258] sm:$0xf0]  ;;  %v4122_v55 = vld [vmem:[#allocation3 + $0x374] sm:$0xf] }
 0x581   : > { %2445 = vmatmul.bf16.vlgmr.msra.gmra.mxu0 %v4653_v7  ;;  %v3649_v63 = vor.u32 %v4086_v52, %v3646_v54  ;;  %v4141_v52 = vld [vmem:[#allocation3 + $0x404] sm:$0xf0] }
 0x582   : > { %2541 = vmatpush.bf16.msra.mxu0 %v3409_v8 }
 0x584   : > { %2477 = vmatpush.bf16.msrb.mxu3 %v3653_v6  ;;  %v1527_v18 = vpop.f32.mrf.mxu2  ;;  %v3718_v6 = vld [vmem:[#allocation3 + $0x2e8] sm:$0xf0] }
 0x585   : > { %v1543_v20 = vrot.slane %v1527_v18, 4  ;;  %v4662_v42 = vpack.c.bf16 %v1527_v18, %v1527_v18  ;;  %v4048_v18 = vld [vmem:[#allocation3 + $0x124] sm:$0xf]  ;;  %v3721_v21 = vor.u32 %v4104_v10, %v3718_v6  ;;  %v3697_v6 = vor.u32 %v4098_v61, %v3694_v62  ;;  %v4154_v62 = vld [vmem:[#allocation3 + $0x474] sm:$0xf] }
 0x586   : > { %2542 = vmatpush.bf16.msra.mxu0 %v3401_v13  ;;  %v3916_v13 = vld [vmem:[#allocation3 + $0x470] sm:$0xf] }
 0x587   : > { %v4657_v27 = vpack.c.bf16 %v1543_v20, %v1543_v20  ;;  %v3605_v20 = vor.u32 %v4077_v5, %v3604_v4  ;;  %v4120_v4 = vld [vmem:[#allocation3 + $0x364] sm:$0xf]  ;;  %v3782_v5 = vld [vmem:[#allocation3 + $0x368] sm:$0xf0] }
 0x588   : > { %2478 = vmatpush.bf16.msrb.mxu3 %v3645_v19  ;;  %v3494_v19 = vld [vmem:[#allocation3 + $0x128] sm:$0xf0]  ;;  %v3785_v15 = vor.u32 %v4120_v4, %v3782_v5  ;;  %v4072_v4 = vld [vmem:[#allocation3 + $0x1e4] sm:$0xf] }
 0x589   : > { %2471 = vmatmul.bf16.vlgmr.msra.gmra.mxu2 %v4657_v27  ;;  %v3497_v30 = vor.u32 %v4048_v18, %v3494_v19  ;;  %v3630_v18 = vld [vmem:[#allocation3 + $0x238] sm:$0xf0]  ;;  %v4118_v19 = vld [vmem:[#allocation3 + $0x354] sm:$0xf]  ;;  %v3590_v5 = vld [vmem:[#allocation3 + $0x1e8] sm:$0xf0] }
 0x58a   : > { %2543 = vmatpush.bf16.msra.mxu0 %v3393_v23  ;;  %2567 = vmatpush.bf16.msra.mxu2 %v3537_v24  ;;  %v3662_v23 = vld [vmem:[#allocation3 + $0x278] sm:$0xf0]  ;;  %v3917_v24 = vor.u32 %v4155_v14, %v3916_v13  ;;  %v3686_v13 = vld [vmem:[#allocation3 + $0x2a8] sm:$0xf0] }
 0x58c   : > { %2479 = vmatpush.bf16.msrb.mxu3 %v3637_v31  ;;  %v4660_v40 = vpop.f32.mrf.mxu2  ;;  %v3908_v31 = vld [vmem:[#allocation3 + $0x460] sm:$0xf] }
 0x58d   : > { %v1546_v43 = vrot.slane %v4660_v40, 4  ;;  %v4677_v33 = vpack.c.bf16 %v4660_v40, %v4660_v40  ;;  %v4151_v40 = vld [vmem:[#allocation3 + $0x454] sm:$0xf0] }
 0x58e   : > { %2544 = vmatpush.bf16.msra.mxu0 %v3385_v34  ;;  %2568 = vmatpush.bf16.msra.mxu2 %v3529_v35  ;;  %v3665_v34 = vor.u32 %v4090_v22, %v3662_v23  ;;  %v4046_v35 = vld [vmem:[#allocation3 + $0x114] sm:$0xf]  ;;  %v3876_v23 = vld [vmem:[#allocation3 + $0x420] sm:$0xf] }
 0x58f   : > { %v4665_v49 = vpack.c.bf16 %v1546_v43, %v1546_v43  ;;  %2458 = vmatmul.bf16.vlgmr.msra.gmra.mxu3 %v4662_v42  ;;  %v3909_v43 = vor.u32 %v4153_v32, %v3908_v31  ;;  %v4080_v31 = vld [vmem:[#allocation3 + $0x224] sm:$0xf]  ;;  %v3622_v32 = vld [vmem:[#allocation3 + $0x228] sm:$0xf0] }
 0x590   : > { %2480 = vmatpush.bf16.msrb.mxu3 %v3629_v41 }
 0x591   : > { %2497 = vmatmul.bf16.vlgmr.msrb.gmra.mxu0 %v4665_v49 }
 0x592   : > { %2545 = vmatpush.bf16.msra.mxu0 %v3377_v46  ;;  %2569 = vmatpush.bf16.msra.mxu2 %v3521_v47  ;;  %v3489_v46 = vor.u32 %v4046_v35, %v3486_v36  ;;  %v3900_v47 = vld [vmem:[#allocation3 + $0x450] sm:$0xf]  ;;  %v3681_v36 = vor.u32 %v4094_v25, %v3678_v28  ;;  %v4148_v28 = vld [vmem:[#allocation3 + $0x444] sm:$0xf] }
 0x593   : > { %v3901_v57 = vor.u32 %v4151_v40, %v3900_v47  ;;  %v4114_v47 = vld [vmem:[#allocation3 + $0x334] sm:$0xf]  ;;  %v3758_v40 = vld [vmem:[#allocation3 + $0x338] sm:$0xf0] }
 0x594   : > { %2481 = vmatpush.bf16.msrb.mxu3 %v3621_v53  ;;  %v1532_v0 = vpop.f32.mrf.mxu2  ;;  %v3705_v53 = vor.u32 %v4100_v44, %v3702_v45  ;;  %v4078_v45 = vld [vmem:[#allocation3 + $0x214] sm:$0xf]  ;;  %v3761_v54 = vor.u32 %v4114_v47, %v3758_v40  ;;  %v3870_v40 = vld [vmem:[#allocation3 + $0x418] sm:$0xf0] }
 0x595   : > { %v1549_v8 = vrot.slane %v1532_v0, 4  ;;  %v4669_v9 = vpack.c.bf16 %v1532_v0, %v1532_v0  ;;  %v3793_v0 = vor.u32 %v4122_v55, %v3790_v56  ;;  %v4074_v55 = vld [vmem:[#allocation3 + $0x1f4] sm:$0xf]  ;;  %v3598_v56 = vld [vmem:[#allocation3 + $0x1f8] sm:$0xf0] }
 0x596   : > { %2546 = vmatpush.bf16.msra.mxu0 %v3369_v58  ;;  %2570 = vmatpush.bf16.msra.mxu2 %v3513_v59  ;;  %v3892_v58 = vld [vmem:[#allocation3 + $0x440] sm:$0xf]  ;;  %v3481_v59 = vor.u32 %v4044_v50, %v3478_v51  ;;  %v4142_v47 = vld [vmem:[#allocation3 + $0x414] sm:$0xf] }
 0x597   : > { %v4671_v16 = vpack.c.bf16 %v1549_v8, %v1549_v8  ;;  %2510 = vmatmul.bf16.vlgmr.msrb.gmra.mxu1 %v4669_v9  ;;  %v3893_v10 = vor.u32 %v4149_v60, %v3892_v58  ;;  %v3860_v51 = vld [vmem:[#allocation3 + $0x400] sm:$0xf]  ;;  %v3606_v58 = vld [vmem:[#allocation3 + $0x208] sm:$0xf0] }
 0x598   : > { %2482 = vmatpush.bf16.msrb.mxu3 %v3613_v1  ;;  %2606 = vmatpush.bf16.msrb.mxu1 %v3729_v2  ;;  %v4084_v1 = vld [vmem:[#allocation3 + $0x244] sm:$0xf]  ;;  %v3638_v2 = vld [vmem:[#allocation3 + $0x248] sm:$0xf0]  ;;  %v3861_v61 = vor.u32 %v4141_v52, %v3860_v51  ;;  %v4138_v52 = vld [vmem:[#allocation3 + $0x3f4] sm:$0xf] }
 0x599   : > { %2523 = vmatmul.bf16.vlgmr.msrb.gmra.mxu2 %v4671_v16  ;;  %v3641_v14 = vor.u32 %v4084_v1, %v3638_v2  ;;  %v3750_v60 = vld [vmem:[#allocation3 + $0x328] sm:$0xf0] }
 0x59a   : > { %2547 = vmatpush.bf16.msra.mxu0 %v3361_v11  ;;  %2571 = vmatpush.bf16.msra.mxu2 %v3505_v12  ;;  %v4147_v11 = vld [vmem:[#allocation3 + $0x434] sm:$0xf0]  ;;  %v4096_v12 = vld [vmem:[#allocation3 + $0x2a4] sm:$0xf]  ;;  %v3542_v51 = vld [vmem:[#allocation3 + $0x188] sm:$0xf0] }
 0x59b   : > { %v3689_v22 = vor.u32 %v4096_v12, %v3686_v13  ;;  %v3910_v12 = vld [vmem:[#allocation3 + $0x468] sm:$0xf0]  ;;  %v3593_v13 = vor.u32 %v4072_v4, %v3590_v5  ;;  %v4130_v5 = vld [vmem:[#allocation3 + $0x3b4] sm:$0xf] }
 0x59c   : > { %2483 = vmatpush.bf16.msrb.mxu3 %v3605_v20  ;;  %2607 = vmatpush.bf16.msrb.mxu1 %v3721_v21  ;;  %v4679_v41 = vpop.f32.mrf.mxu2  ;;  %v3774_v20 = vld [vmem:[#allocation3 + $0x358] sm:$0xf0] }
 0x59e   : > { %2548 = vmatpush.bf16.msra.mxu0 %v3353_v29  ;;  %2572 = vmatpush.bf16.msra.mxu2 %v3497_v30  ;;  %v3633_v29 = vor.u32 %v4082_v17, %v3630_v18  ;;  %v3777_v30 = vor.u32 %v4118_v19, %v3774_v20  ;;  %v3582_v17 = vld [vmem:[#allocation3 + $0x1d8] sm:$0xf0]  ;;  %v4108_v18 = vld [vmem:[#allocation3 + $0x304] sm:$0xf]  ;;  %v4150_v19 = vld [vmem:[#allocation3 + $0x454] sm:$0xf] }
 0x59f   : > { %2484 = vmatmul.bf16.vlgmr.msrb.gmra.mxu3 %v4677_v33  ;;  %v3902_v20 = vld [vmem:[#allocation3 + $0x458] sm:$0xf0] }
 0x5a0   : > { %2528 = vmatpush.bf16.msra.mxu3 %v3917_v24  ;;  %2608 = vmatpush.bf16.msrb.mxu1 %v3713_v37  ;;  %v4145_v24 = vld [vmem:[#allocation3 + $0x424] sm:$0xf0]  ;;  %v3868_v37 = vld [vmem:[#allocation3 + $0x410] sm:$0xf]  ;;  %v3905_v25 = vor.u32 %v4150_v19, %v3902_v20 }
 0x5a1   : > { %2549 = vmatmul.bf16.vlgmr.msra.gmra.mxu0 %v4651_v3  ;;  %v3884_v3 = vld [vmem:[#allocation3 + $0x430] sm:$0xf]  ;;  %v3877_v35 = vor.u32 %v4145_v24, %v3876_v23  ;;  %v4068_v23 = vld [vmem:[#allocation3 + $0x1c4] sm:$0xf]  ;;  %v3574_v24 = vld [vmem:[#allocation3 + $0x1c8] sm:$0xf0] }
 0x5a2   : > { %2593 = vmatpush.bf16.msrb.mxu0 %v3665_v34  ;;  %2573 = vmatpush.bf16.msra.mxu2 %v3489_v46  ;;  %v3885_v21 = vor.u32 %v4147_v11, %v3884_v3  ;;  %v3766_v34 = vld [vmem:[#allocation3 + $0x348] sm:$0xf0]  ;;  %v3614_v46 = vld [vmem:[#allocation3 + $0x218] sm:$0xf0]  ;;  %v4152_v11 = vld [vmem:[#allocation3 + $0x464] sm:$0xf] }
 0x5a3   : > { %v3742_v3 = vld [vmem:[#allocation3 + $0x318] sm:$0xf0] }
 0x5a4   : > { %2529 = vmatpush.bf16.msra.mxu3 %v3909_v43  ;;  %2609 = vmatpush.bf16.msrb.mxu1 %v3705_v53  ;;  %v1537_v8 = vpop.f32.mrf.mxu2  ;;  %v3670_v43 = vld [vmem:[#allocation3 + $0x288] sm:$0xf0]  ;;  %v3617_v53 = vor.u32 %v4078_v45, %v3614_v46  ;;  %v3550_v45 = vld [vmem:[#allocation3 + $0x198] sm:$0xf0] }
 0x5a5   : > { %v3673_v50 = vor.u32 %v4092_v39, %v3670_v43  ;;  %v4688_v8 = vpack.c.bf16 %v4679_v41, %v4679_v41  ;;  %v3734_v41 = vld [vmem:[#allocation3 + $0x308] sm:$0xf0]  ;;  %v4144_v39 = vld [vmem:[#allocation3 + $0x424] sm:$0xf] }
 0x5a6   : > { %2594 = vmatpush.bf16.msrb.mxu0 %v3657_v48  ;;  %2574 = vmatpush.bf16.msra.mxu2 %v3481_v59  ;;  %v3869_v48 = vor.u32 %v4143_v38, %v3868_v37  ;;  %v4112_v59 = vld [vmem:[#allocation3 + $0x324] sm:$0xf]  ;;  %v3558_v37 = vld [vmem:[#allocation3 + $0x1a8] sm:$0xf0] }
 0x5a7   : > { %2562 = vmatmul.bf16.vlgmr.msra.gmra.mxu1 %v4653_v7  ;;  %v4116_v7 = vld [vmem:[#allocation3 + $0x344] sm:$0xf]  ;;  %v3753_v2 = vor.u32 %v4112_v59, %v3750_v60  ;;  %v3878_v43 = vld [vmem:[#allocation3 + $0x428] sm:$0xf0] }
 0x5a8   : > { %2530 = vmatpush.bf16.msra.mxu3 %v3901_v57  ;;  %2610 = vmatpush.bf16.msrb.mxu1 %v3697_v6  ;;  %v3769_v44 = vor.u32 %v4116_v7, %v3766_v34  ;;  %v4076_v57 = vld [vmem:[#allocation3 + $0x204] sm:$0xf]  ;;  %v4110_v6 = vld [vmem:[#allocation3 + $0x314] sm:$0xf]  ;;  %v3881_v46 = vor.u32 %v4144_v39, %v3878_v43  ;;  %v3846_v60 = vld [vmem:[#allocation3 + $0x3e8] sm:$0xf0] }
 0x5a9   : > { %2575 = vmatmul.bf16.vlgmr.msra.gmra.mxu2 %v4662_v42  ;;  %v3625_v42 = vor.u32 %v4080_v31, %v3622_v32  ;;  %v3609_v1 = vor.u32 %v4076_v57, %v3606_v58  ;;  %v4066_v31 = vld [vmem:[#allocation3 + $0x1b4] sm:$0xf]  ;;  %v3566_v32 = vld [vmem:[#allocation3 + $0x1b8] sm:$0xf0]  ;;  %v4136_v59 = vld [vmem:[#allocation3 + $0x3e4] sm:$0xf] }
 0x5aa   : > { %2595 = vmatpush.bf16.msrb.mxu0 %v3649_v63  ;;  %2619 = vmatpush.bf16.msrb.mxu2 %v3793_v0  ;;  %v3918_v63 = vld [vmem:[#allocation3 + $0x478] sm:$0xf0]  ;;  %v3601_v0 = vor.u32 %v4074_v55, %v3598_v56  ;;  %v4146_v34 = vld [vmem:[#allocation3 + $0x434] sm:$0xf]  ;;  %v3862_v55 = vld [vmem:[#allocation3 + $0x408] sm:$0xf0] }
 0x5ac   : > { %2531 = vmatpush.bf16.msra.mxu3 %v3893_v10  ;;  %2611 = vmatpush.bf16.msrb.mxu1 %v3689_v22  ;;  %v3921_v10 = vor.u32 %v4154_v62, %v3918_v63  ;;  %v3737_v22 = vor.u32 %v4108_v18, %v3734_v41  ;;  %v4134_v62 = vld [vmem:[#allocation3 + $0x3d4] sm:$0xf]  ;;  %v3838_v63 = vld [vmem:[#allocation3 + $0x3d8] sm:$0xf0] }
 0x5ae   : > { %2596 = vmatpush.bf16.msrb.mxu0 %v3641_v14  ;;  %2620 = vmatpush.bf16.msrb.mxu2 %v3785_v15  ;;  %v3745_v14 = vor.u32 %v4110_v6, %v3742_v3  ;;  %v4070_v15 = vld [vmem:[#allocation3 + $0x1d4] sm:$0xf]  ;;  %v4128_v3 = vld [vmem:[#allocation3 + $0x3a4] sm:$0xf] }
 0x5b0   : > { %2532 = vmatpush.bf16.msra.mxu3 %v3885_v21  ;;  %2612 = vmatpush.bf16.msrb.mxu1 %v3681_v36  ;;  %v3585_v21 = vor.u32 %v4070_v15, %v3582_v17  ;;  %v4064_v36 = vld [vmem:[#allocation3 + $0x1a4] sm:$0xf]  ;;  %v3798_v17 = vld [vmem:[#allocation3 + $0x388] sm:$0xf0] }
 0x5b1   : > { %v4124_v15 = vld [vmem:[#allocation3 + $0x384] sm:$0xf] }
 0x5b2   : > { %2597 = vmatpush.bf16.msrb.mxu0 %v3633_v29  ;;  %2621 = vmatpush.bf16.msrb.mxu2 %v3777_v30  ;;  %v3894_v29 = vld [vmem:[#allocation3 + $0x448] sm:$0xf0]  ;;  %v3577_v30 = vor.u32 %v4068_v23, %v3574_v24 }
 0x5b3   : > { %v3897_v7 = vor.u32 %v4148_v28, %v3894_v29 }
 0x5b4   : > { %2533 = vmatpush.bf16.msra.mxu3 %v3877_v35  ;;  %2613 = vmatpush.bf16.msrb.mxu1 %v3673_v50  ;;  %v3886_v35 = vld [vmem:[#allocation3 + $0x438] sm:$0xf0]  ;;  %v4060_v50 = vld [vmem:[#allocation3 + $0x184] sm:$0xf] }
 0x5b5   : > { %v3889_v38 = vor.u32 %v4146_v34, %v3886_v35  ;;  %v3545_v56 = vor.u32 %v4060_v50, %v3542_v51 }
 0x5b6   : > { %2598 = vmatpush.bf16.msrb.mxu0 %v3625_v42  ;;  %2622 = vmatpush.bf16.msrb.mxu2 %v3769_v44  ;;  %v3561_v42 = vor.u32 %v4064_v36, %v3558_v37  ;;  %v4062_v44 = vld [vmem:[#allocation3 + $0x194] sm:$0xf] }
 0x5b7   : > { %2614 = vmatmul.bf16.vlgmr.msrb.gmra.mxu1 %v4665_v49  ;;  %v3913_v49 = vor.u32 %v4152_v11, %v3910_v12  ;;  %v3814_v11 = vld [vmem:[#allocation3 + $0x3a8] sm:$0xf0] }
 0x5b8   : > { %2534 = vmatpush.bf16.msra.mxu3 %v3869_v48  ;;  %v3553_v48 = vor.u32 %v4062_v44, %v3550_v45  ;;  %v3817_v12 = vor.u32 %v4128_v3, %v3814_v11 }
 0x5ba   : > { %2599 = vmatpush.bf16.msrb.mxu0 %v3617_v53  ;;  %2623 = vmatpush.bf16.msrb.mxu2 %v3761_v54  ;;  %v3854_v53 = vld [vmem:[#allocation3 + $0x3f8] sm:$0xf0]  ;;  %v4140_v54 = vld [vmem:[#allocation3 + $0x404] sm:$0xf] }
 0x5bb   : > { %v3857_v57 = vor.u32 %v4138_v52, %v3854_v53  ;;  %v3865_v58 = vor.u32 %v4140_v54, %v3862_v55 }
 0x5bc   : > { %2535 = vmatpush.bf16.msra.mxu3 %v3861_v61  ;;  %v3849_v61 = vor.u32 %v4136_v59, %v3846_v60 }
 0x5be   : > { %2600 = vmatpush.bf16.msrb.mxu0 %v3609_v1  ;;  %2624 = vmatpush.bf16.msrb.mxu2 %v3753_v2  ;;  %v4132_v1 = vld [vmem:[#allocation3 + $0x3c4] sm:$0xf]  ;;  %v3830_v2 = vld [vmem:[#allocation3 + $0x3c8] sm:$0xf0] }
 0x5bf   : > { %2536 = vmatmul.bf16.vlgmr.msra.gmra.mxu3 %v4688_v8  ;;  %v3833_v4 = vor.u32 %v4132_v1, %v3830_v2 }
 0x5c0   : > { %2580 = vmatpush.bf16.msrb.mxu3 %v3601_v0  ;;  %v3841_v0 = vor.u32 %v4134_v62, %v3838_v63 }
 0x5c1   : > { %2601 = vmatmul.bf16.vlgmr.msrb.gmra.mxu0 %v4677_v33  ;;  %v3569_v33 = vor.u32 %v4066_v31, %v3566_v32 }
 0x5c2   : > { %2645 = vmatpush.bf16.msra.mxu0 %v3921_v10  ;;  %2625 = vmatpush.bf16.msrb.mxu2 %v3745_v14  ;;  %v3822_v10 = vld [vmem:[#allocation3 + $0x3b8] sm:$0xf0] }
 0x5c3   : > { %v3825_v6 = vor.u32 %v4130_v5, %v3822_v10  ;;  %v3806_v14 = vld [vmem:[#allocation3 + $0x398] sm:$0xf0] }
 0x5c4   : > { %2581 = vmatpush.bf16.msrb.mxu3 %v3593_v13  ;;  %v4126_v13 = vld [vmem:[#allocation3 + $0x394] sm:$0xf] }
 0x5c6   : > { %2646 = vmatpush.bf16.msra.mxu0 %v3913_v49  ;;  %2626 = vmatpush.bf16.msrb.mxu2 %v3737_v22 }
 0x5c8   : > { %2582 = vmatpush.bf16.msrb.mxu3 %v3585_v21 }
 0x5c9   : > { %2627 = vmatmul.bf16.vlgmr.msrb.gmra.mxu2 %v4669_v9  ;;  %v3873_v9 = vor.u32 %v4142_v47, %v3870_v40 }
 0x5ca   : > { %2647 = vmatpush.bf16.msra.mxu0 %v3905_v25 }
 0x5cc   : > { %2583 = vmatpush.bf16.msrb.mxu3 %v3577_v30 }
 0x5ce   : > { %2648 = vmatpush.bf16.msra.mxu0 %v3897_v7 }
 0x5d0   : > { %2584 = vmatpush.bf16.msrb.mxu3 %v3569_v33 }
 0x5d2   : > { %2649 = vmatpush.bf16.msra.mxu0 %v3889_v38 }
 0x5d4   : > { %2585 = vmatpush.bf16.msrb.mxu3 %v3561_v42 }
 0x5d6   : > { %2650 = vmatpush.bf16.msra.mxu0 %v3881_v46 }
 0x5d8   : > { %2586 = vmatpush.bf16.msrb.mxu3 %v3553_v48 }
 0x5da   : > { %2651 = vmatpush.bf16.msra.mxu0 %v3873_v9 }
 0x5dc   : > { %2587 = vmatpush.bf16.msrb.mxu3 %v3545_v56 }
 0x5de   : > { %2652 = vmatpush.bf16.msra.mxu0 %v3865_v58 }
 0x5df   : > { %2588 = vmatmul.bf16.vlgmr.msrb.gmra.mxu3 %v4657_v27  ;;  %v3809_v27 = vor.u32 %v4126_v13, %v3806_v14 }
 0x5e0   : > { %2632 = vmatpush.bf16.msra.mxu3 %v3857_v57 }
 0x5e1   : > { %2653 = vmatmul.bf16.vlgmr.msra.gmra.mxu0 %v4688_v8  ;;  %v3801_v8 = vor.u32 %v4124_v15, %v3798_v17 }
 0x5e4   : > { %2633 = vmatpush.bf16.msra.mxu3 %v3849_v61 }
 0x5e8   : > { %2634 = vmatpush.bf16.msra.mxu3 %v3841_v0 }
 0x5ec   : > { %2635 = vmatpush.bf16.msra.mxu3 %v3833_v4 }
 0x5f0   : > { %2636 = vmatpush.bf16.msra.mxu3 %v3825_v6 }
 0x5f4   : > { %2637 = vmatpush.bf16.msra.mxu3 %v3817_v12 }
 0x5f8   : > { %2638 = vmatpush.bf16.msra.mxu3 %v3809_v27 }
 0x5fc   : > { %2639 = vmatpush.bf16.msra.mxu3 %v3801_v8 }
 0x5fe   : > { %v2446_v49 = vpop.f32.mrf.mxu0 }
 0x5ff   : > { %2640 = vmatmul.bf16.vlgmr.msra.gmra.mxu3 %v4671_v16 }
 0x602   : > { %v2433_v18 = vpop.f32.mrf.mxu3 }
 0x603   : > { %v2447_v16 = vadd.f32 %v2446_v49, %v2433_v18 }
 0x606   : > { %v2448_v41 = vpop.f32.mrf.mxu0 }
 0x60a   : > { %v2435_v19 = vpop.f32.mrf.mxu3 }
 0x60c   : > { %v2472_v20 = vpop.f32.mrf.mxu2 }
 0x60e   : > { %v2498_v21 = vpop.f32.mrf.mxu0 }
 0x612   : > { %v2459_v22 = vpop.f32.mrf.mxu3 }
 0x613   : > { %v2460_v37 = vadd.f32 %v2459_v22, %v2447_v16 }
 0x614   : > { %v2474_v23 = vpop.f32.mrf.mxu2  ;;  %v2511_v24 = vpop.f32.mrf.mxu1 }
 0x615   : > { %v2473_v42 = vadd.f32 %v2472_v20, %v2460_v37 }
 0x616   : > { %v2500_v25 = vpop.f32.mrf.mxu0 }
 0x61a   : > { %v2461_v28 = vpop.f32.mrf.mxu3 }
 0x61c   : > { %v2513_v29 = vpop.f32.mrf.mxu1  ;;  %v2524_v30 = vpop.f32.mrf.mxu2 }
 0x61e   : > { %v2550_v31 = vpop.f32.mrf.mxu0 }
 0x622   : > { %v2485_v32 = vpop.f32.mrf.mxu3 }
 0x623   : > { %v2486_v44 = vadd.f32 %v2485_v32, %v2473_v42 }
 0x624   : > { %v2526_v7 = vpop.f32.mrf.mxu2  ;;  %v2563_v34 = vpop.f32.mrf.mxu1 }
 0x625   : > { %v2564_v35 = vadd.f32 %v2563_v34, %v2550_v31  ;;  %v2499_v47 = vadd.f32 %v2498_v21, %v2486_v44 }
 0x626   : > { %v2552_v33 = vpop.f32.mrf.mxu0 }
 0x627   : > { %v2512_v40 = vadd.f32 %v2511_v24, %v2499_v47 }
 0x629   : > { %v2525_v51 = vadd.f32 %v2524_v30, %v2512_v40 }
 0x62a   : > { %v2487_v36 = vpop.f32.mrf.mxu3 }
 0x62c   : > { %v2565_v38 = vpop.f32.mrf.mxu1  ;;  %v2576_v39 = vpop.f32.mrf.mxu2 }
 0x62d   : > { %v2577_v43 = vadd.f32 %v2576_v39, %v2564_v35 }
 0x634   : > { %v2578_v45 = vpop.f32.mrf.mxu2  ;;  %v2615_v46 = vpop.f32.mrf.mxu1 }
 0x63c   : > { %v2617_v50 = vpop.f32.mrf.mxu1 }
 0x63e   : > { %v2602_v48 = vpop.f32.mrf.mxu0 }
 0x642   : > { %v2537_v9 = vpop.f32.mrf.mxu3 }
 0x643   : > { %v2538_v52 = vadd.f32 %v2537_v9, %v2525_v51 }
 0x645   : > { %v2658_v53 = vsel %vm1442_vm5, %v2538_v52, 0.0 }
 0x646   : > { %v2659_v54 = vrot.slane %v2658_v53, 4  ;;  %v2604_v55 = vpop.f32.mrf.mxu0 }
 0x648   : > { %v2660_v56 = vadd.f32 %v2659_v54, %v2658_v53 }
 0x64a   : > { %v2661_v57 = vrot.slane %v2660_v56, 2  ;;  %v2539_v58 = vpop.f32.mrf.mxu3 }
 0x64c   : > { %v2662_v59 = vadd.f32 %v2661_v57, %v2660_v56  ;;  %v2628_v60 = vpop.f32.mrf.mxu2  ;;  %v4157_v57 = vld [vmem:[%s4775_s9 + $0x8] sm:$0xff] }
 0x64e   : > { %v2663_v61 = vrot.slane %v2662_v59, 1 }
 0x650   : > { %v2664_v62 = vadd.f32 %v2663_v61, %v2662_v59 }
 0x652   : > { %v2672_v63 = vmul.f32 %v2664_v62, %v4633_v26 }
 0x654   : > { %v2674_v0 = vsub.f32 %v2538_v52, %v2672_v63  ;;  %v2630_v1 = vpop.f32.mrf.mxu2  ;;  %v4156_v52 = vld [vmem:[%s4775_s9] sm:$0xff]  ;;  %v2728_v63 = vld [vmem:[%s4775_s9 + $0x10] sm:$0x3] }
 0x655   : > { %v2740_v1 = vunpack.c.l.b16 %v2728_v63 }
 0x656   : > { %v2676_v2 = vmul.f32 %v2674_v0, %v2674_v0 }
 0x658   : > { %v2678_v4 = vsel %vm1442_vm5, %v2676_v2, 0.0 }
 0x659   : > { %v2679_v5 = vrot.slane %v2678_v4, 4 }
 0x65b   : > { %v2680_v10 = vadd.f32 %v2679_v5, %v2678_v4  ;;  %v2743_v5 = vpack.c.b16 %v2740_v1, %v2740_v1 }
 0x65d   : > { %v2681_v3 = vrot.slane %v2680_v10, 2 }
 0x65e   : > { %v2654_v6 = vpop.f32.mrf.mxu0 }
 0x65f   : > { %v2682_v11 = vadd.f32 %v2681_v3, %v2680_v10 }
 0x661   : > { %v2683_v14 = vrot.slane %v2682_v11, 1 }
 0x662   : > { %v2589_v12 = vpop.f32.mrf.mxu3 }
 0x663   : > { %v2590_v13 = vadd.f32 %v2589_v12, %v2577_v43  ;;  %v2684_v15 = vadd.f32 %v2683_v14, %v2682_v11 }
 0x665   : > { %v2603_v27 = vadd.f32 %v2602_v48, %v2590_v13  ;;  %v2692_v49 = vmul.f32 %v2684_v15, %v4633_v26 }
 0x666   : > { %v2656_v17 = vpop.f32.mrf.mxu0 }
 0x667   : > { %v2616_v8 = vadd.f32 %v2615_v46, %v2603_v27  ;;  %v2694_v18 = vadd.f32 1e-05, %v2692_v49  ;;  %v2829_v27 = vld [vmem:[%s4776_s10] sm:$0xff] }
 0x668   : > { %v2832_v15 = vunpack.c.l.bf16 %v2829_v27  ;;  %v2833_v49 = vunpack.c.h.bf16 %v2829_v27 }
 0x669   : > { %4230 = vrsqrt.f32 %v2694_v18  ;;  %vm2702_vm14 = vweird.f32 %v2694_v18  ;;  %v2629_v29 = vadd.f32 %v2628_v60, %v2616_v8 }
 0x66a   : > { %v2591_v41 = vpop.f32.mrf.mxu3  ;;  %v2842_v17 = vperm.slane %v2832_v15, 0 }
 0x66b   : > { %v2843_v41 = vperm.slane %v2832_v15, 2 }
 0x66f   : > { %v4231_v19 = vpop.eup %4230 }
 0x670   : > { %v2697_v20 = vmul.f32 %v4231_v19, %v2694_v18  ;;  %vm2703_vm13 = vweird.f32 %v4231_v19  ;;  %v2844_v18 = vperm.slane %v2832_v15, 4 }
 0x671   : > { %vm2704_vm15 = vmor %vm2702_vm14, %vm2703_vm13 }
 0x672   : > { %v2698_v21 = vmul.f32 %v4231_v19, %v2697_v20  ;;  %v2845_v20 = vperm.slane %v2832_v15, 6 }
 0x674   : > { %v2699_v22 = vmul.f32 0.5, %v2698_v21  ;;  %v2846_v21 = vperm.slane %v2833_v49, 0 }
 0x676   : > { %v2700_v23 = vsub.f32 1.5, %v2699_v22  ;;  %v2830_v22 = vld [vmem:[%s4776_s10 + $0x8] sm:$0xff] }
 0x678   : > { %v2701_v24 = vmul.f32 %v4231_v19, %v2700_v23 }
 0x67a   : > { %v2705_v25 = vsel %vm2704_vm15, %v4231_v19, %v2701_v24  ;;  %v2878_v19 = vperm.slane %v2842_v17, 0  ;;  %v2880_v24 = vperm.slane %v2844_v18, 0 }
 0x67b   : > { %v2716_v28 = vmul.f32 %v2705_v25, %v2674_v0  ;;  %v2879_v25 = vperm.slane %v2843_v41, 0 }
 0x67d   : > { %v2720_v31 = vmul.f32 0.2, %v2716_v28  ;;  %vm2718_vm0 = vcmp.gt.f32.partialorder %v2716_v28, 0.0 }
 0x67f   : > { %v2722_v34 = vsel %vm2718_vm0, %v2716_v28, %v2720_v31  ;;  %v2834_v31 = vunpack.c.l.bf16 %v2830_v22 }
 0x680   : > { %v2729_v35 = vpack.c.bf16 %v2722_v34, %v2722_v34  ;;  %v2882_v34 = vperm.slane %v2846_v21, 0 }
 0x681   : > { %v2853_v1 = vperm.slane %v2834_v31, 6 }
 0x682   : > { %v2641_v30 = vpop.f32.mrf.mxu3  ;;  %v2754_v36 = vsel %vm1512_vm11, %v2729_v35, 0 }
 0x683   : > { %v2642_v32 = vadd.f32 %v2641_v30, %v2629_v29  ;;  %2766 = vmatpush.bf16.msra.mxu1 %v2754_v36  ;;  %v2881_v30 = vperm.slane %v2845_v20, 0  ;;  %v2847_v36 = vperm.slane %v2833_v49, 2  ;;  %v2889_v17 = vperm.slane %v2853_v1, 0 }
 0x685   : > { %v2655_v7 = vadd.f32 %v2654_v6, %v2642_v32 }
 0x686   : > { %3930 = vmatmul.msk.bf16.vlgmr.msra.gmra.mxu1 %vm1502_vm12, %v4156_v52 }
 0x687   : > { %v2665_v33 = vsel %vm1442_vm5, %v2655_v7, 0.0 }
 0x688   : > { %v2666_v16 = vrot.slane %v2665_v33, 4 }
 0x68a   : > { %v2667_v37 = vadd.f32 %v2666_v16, %v2665_v33  ;;  %v2643_v38 = vpop.f32.mrf.mxu3 }
 0x68c   : > { %v2668_v39 = vrot.slane %v2667_v37, 2 }
 0x68e   : > { %v2669_v43 = vadd.f32 %v2668_v39, %v2667_v37 }
 0x690   : > { %v2670_v42 = vrot.slane %v2669_v43, 1 }
 0x692   : > { %v2671_v44 = vadd.f32 %v2670_v42, %v2669_v43  ;;  %v2849_v43 = vperm.slane %v2833_v49, 6  ;;  %v2850_v42 = vperm.slane %v2834_v31, 0 }
 0x694   : > { %v2673_v45 = vmul.f32 %v2671_v44, %v4633_v26 }
 0x696   : > { %v2675_v46 = vsub.f32 %v2655_v7, %v2673_v45  ;;  %3931 = vmatmul.msk.bf16.gmra.mxu1 %vm1502_vm12, %v4157_v57  ;;  %v2848_v7 = vperm.slane %v2833_v49, 4 }
 0x698   : > { %v2677_v47 = vmul.f32 %v2675_v46, %v2675_v46 }
 0x69a   : > { %v2685_v40 = vsel %vm1442_vm5, %v2677_v47, 0.0 }
 0x69b   : > { %v2686_v48 = vrot.slane %v2685_v40, 4 }
 0x69d   : > { %v2687_v50 = vadd.f32 %v2686_v48, %v2685_v40  ;;  %v2883_v48 = vperm.slane %v2847_v36, 0 }
 0x69f   : > { %v2688_v51 = vrot.slane %v2687_v50, 2 }
 0x6a1   : > { %v2689_v9 = vadd.f32 %v2688_v51, %v2687_v50 }
 0x6a3   : > { %v2690_v53 = vrot.slane %v2689_v9, 1 }
 0x6a5   : > { %v2691_v54 = vadd.f32 %v2690_v53, %v2689_v9  ;;  %v2885_v9 = vperm.slane %v2849_v43, 0 }
 0x6a6   : > { %3932 = vmatmul.msk.bf16.gmra.mxu1 %vm1502_vm12, %v2743_v5 }
 0x6a7   : > { %v2693_v55 = vmul.f32 %v2691_v54, %v4633_v26 }
 0x6a9   : > { %v2695_v56 = vadd.f32 1e-05, %v2693_v55 }
 0x6ab   : > { %4232 = vrsqrt.f32 %v2695_v56  ;;  %vm2712_vm2 = vweird.f32 %v2695_v56 }
 0x6b1   : > { %v4233_v58 = vpop.eup %4232 }
 0x6b2   : > { %v2707_v59 = vmul.f32 %v4233_v58, %v2695_v56  ;;  %vm2713_vm1 = vweird.f32 %v4233_v58 }
 0x6b3   : > { %vm2714_vm3 = vmor %vm2712_vm2, %vm2713_vm1 }
 0x6b4   : > { %v2708_v60 = vmul.f32 %v4233_v58, %v2707_v59 }
 0x6b6   : > { %v2709_v61 = vmul.f32 0.5, %v2708_v60  ;;  %v2852_v60 = vperm.slane %v2834_v31, 4 }
 0x6b8   : > { %v2710_v62 = vsub.f32 1.5, %v2709_v61  ;;  %v2851_v61 = vperm.slane %v2834_v31, 2 }
 0x6ba   : > { %v2711_v0 = vmul.f32 %v4233_v58, %v2710_v62 }
 0x6bc   : > { %v2715_v26 = vsel %vm2714_vm3, %v4233_v58, %v2711_v0 }
 0x6bd   : > { %v2717_v2 = vmul.f32 %v2715_v26, %v2675_v46  ;;  %v2884_v46 = vperm.slane %v2848_v7, 0 }
 0x6bf   : > { %vm2719_vm4 = vcmp.gt.f32.partialorder %v2717_v2, 0.0  ;;  %v2721_v4 = vmul.f32 0.2, %v2717_v2 }
 0x6c1   : > { %v2723_v10 = vsel %vm2719_vm4, %v2717_v2, %v2721_v4 }
 0x6c2   : > { %v2730_v6 = vpack.c.bf16 %v2723_v10, %v2723_v10 }
 0x6c4   : > { %v2757_v3 = vsel %vm1512_vm11, %v2730_v6, 0 }
 0x6c5   : > { %2789 = vmatpush.bf16.msra.mxu2 %v2757_v3  ;;  %v2888_v3 = vperm.slane %v2852_v60, 0 }
 0x6c8   : > { %3933 = vmatmul.msk.bf16.vlgmr.msra.gmra.mxu2 %vm1502_vm12, %v4156_v52  ;;  %v2886_v52 = vperm.slane %v2850_v42, 0 }
 0x6d8   : > { %3934 = vmatmul.msk.bf16.gmra.mxu2 %vm1502_vm12, %v4157_v57  ;;  %v2835_v57 = vunpack.c.h.bf16 %v2830_v22 }
 0x6da   : > { %v2854_v4 = vperm.slane %v2835_v57, 0 }
 0x6dc   : > { %v2890_v20 = vperm.slane %v2854_v4, 0 }
 0x6e8   : > { %3935 = vmatmul.msk.bf16.gmra.mxu2 %vm1502_vm12, %v2743_v5  ;;  %v2831_v5 = vld [vmem:[%s4776_s10 + $0x10] sm:$0x3] }
 0x6e9   : > { %v2836_v49 = vunpack.c.l.bf16 %v2831_v5 }
 0x703   : > { %v2768_v11 = vpop.f32.mrf.mxu1 }
 0x704   : > { %v2807_v23 = vrot.slane %v2768_v11, 4  ;;  %v2896_v28 = vmul.f32 %v2878_v19, %v2768_v11  ;;  %v2887_v11 = vperm.slane %v2851_v61, 0  ;;  %v2856_v19 = vperm.slane %v2835_v57, 4 }
 0x706   : > { %v2898_v35 = vmul.f32 %v2880_v24, %v2807_v23  ;;  %v2914_v37 = vsel %vm1442_vm5, %v2896_v28, 0.0  ;;  %v2855_v24 = vperm.slane %v2835_v57, 2  ;;  %v2892_v7 = vperm.slane %v2856_v19, 0 }
 0x708   : > { %v2917_v40 = vsel %vm1442_vm5, %v2898_v35, 0.0 }
 0x70b   : > { %v2770_v12 = vpop.f32.mrf.mxu1 }
 0x70c   : > { %v2813_v45 = vrot.slane %v2770_v12, 4  ;;  %v2900_v47 = vmul.f32 %v2882_v34, %v2770_v12 }
 0x70e   : > { %v2902_v53 = vmul.f32 %v2884_v46, %v2813_v45  ;;  %v2921_v55 = vsel %vm1442_vm5, %v2900_v47, 0.0  ;;  %v2859_v47 = vperm.slane %v2836_v49, 2 }
 0x710   : > { %v2925_v10 = vsel %vm1442_vm5, %v2902_v53, 0.0 }
 0x713   : > { %v4721_v13 = vpop.f32.mrf.mxu1 }
 0x714   : > { %v2904_v26 = vmul.f32 %v2886_v52, %v4721_v13  ;;  %v2819_v6 = vrot.slane %v4721_v13, 4  ;;  %v2895_v52 = vperm.slane %v2859_v47, 0 }
 0x716   : > { %v2929_v15 = vsel %vm1442_vm5, %v2904_v26, 0.0  ;;  %v2906_v21 = vmul.f32 %v2888_v3, %v2819_v6 }
 0x718   : > { %v2933_v34 = vsel %vm1442_vm5, %v2906_v21, 0.0 }
 0x71b   : > { %v4723_v14 = vpop.f32.mrf.mxu1 }
 0x71c   : > { %v2908_v35 = vmul.f32 %v2890_v20, %v4723_v14 }
 0x723   : > { %v4728_v8 = vpop.f32.mrf.mxu1 }
 0x72b   : > { %v2780_v29 = vpop.f32.mrf.mxu1 }
 0x72c   : > { %v2857_v29 = vperm.slane %v2835_v57, 6 }
 0x74b   : > { %v2791_v32 = vpop.f32.mrf.mxu2 }
 0x74c   : > { %v2808_v33 = vrot.slane %v2791_v32, 4  ;;  %v2897_v16 = vmul.f32 %v2879_v25, %v2791_v32  ;;  %v2825_v32 = vrot.slane %v4723_v14, 4 }
 0x74e   : > { %v2899_v38 = vmul.f32 %v2881_v30, %v2808_v33  ;;  %v2915_v39 = vsel %vm1442_vm5, %v2897_v16, 0.0  ;;  %v2858_v30 = vperm.slane %v2836_v49, 0  ;;  %v2891_v33 = vperm.slane %v2855_v24, 0 }
 0x74f   : > { %v2916_v44 = vadd.f32 %v2915_v39, %v2914_v37  ;;  %v2893_v37 = vperm.slane %v2857_v29, 0  ;;  %v2910_v39 = vmul.f32 %v2892_v7, %v2825_v32 }
 0x750   : > { %v2919_v51 = vsel %vm1442_vm5, %v2899_v38, 0.0  ;;  %v2894_v38 = vperm.slane %v2858_v30, 0 }
 0x751   : > { %v2918_v50 = vadd.f32 %v2917_v40, %v2916_v44  ;;  %v2937_v44 = vsel %vm1442_vm5, %v2908_v35, 0.0 }
 0x752   : > { %v2912_v14 = vmul.f32 %v2894_v38, %v4728_v8  ;;  %v4221_v8 = vld [vmem:[#allocation2] ss:$0 sm:$0xff] }
 0x753   : > { %v2920_v54 = vadd.f32 %v2919_v51, %v2918_v50  ;;  %v2793_v56 = vpop.f32.mrf.mxu2 }
 0x754   : > { %v2814_v58 = vrot.slane %v2793_v56, 4  ;;  %v2901_v59 = vmul.f32 %v2883_v48, %v2793_v56 }
 0x755   : > { %v2922_v62 = vadd.f32 %v2921_v55, %v2920_v54  ;;  %v2945_v55 = vsel %vm1442_vm5, %v2912_v14, 0.0 }
 0x756   : > { %v2903_v63 = vmul.f32 %v2885_v9, %v2814_v58  ;;  %v2923_v0 = vsel %vm1442_vm5, %v2901_v59, 0.0  ;;  %v2941_v9 = vsel %vm1442_vm5, %v2910_v39, 0.0 }
 0x757   : > { %v2924_v2 = vadd.f32 %v2923_v0, %v2922_v62 }
 0x758   : > { %v2927_v27 = vsel %vm1442_vm5, %v2903_v63, 0.0 }
 0x759   : > { %v2926_v12 = vadd.f32 %v2925_v10, %v2924_v2 }
 0x75b   : > { %v2928_v18 = vadd.f32 %v2927_v27, %v2926_v12  ;;  %v2796_v41 = vpop.f32.mrf.mxu2 }
 0x75c   : > { %v2820_v22 = vrot.slane %v2796_v41, 4  ;;  %v2905_v23 = vmul.f32 %v2887_v11, %v2796_v41 }
 0x75d   : > { %v2930_v25 = vadd.f32 %v2929_v15, %v2928_v18 }
 0x75e   : > { %v2907_v28 = vmul.f32 %v2889_v17, %v2820_v22  ;;  %v2931_v13 = vsel %vm1442_vm5, %v2905_v23, 0.0 }
 0x75f   : > { %v2932_v31 = vadd.f32 %v2931_v13, %v2930_v25 }
 0x760   : > { %v2935_v36 = vsel %vm1442_vm5, %v2907_v28, 0.0 }
 0x761   : > { %v2934_v16 = vadd.f32 %v2933_v34, %v2932_v31 }
 0x763   : > { %v2936_v43 = vadd.f32 %v2935_v36, %v2934_v16  ;;  %v2798_v42 = vpop.f32.mrf.mxu2 }
 0x764   : > { %v2826_v45 = vrot.slane %v2798_v42, 4  ;;  %v2909_v46 = vmul.f32 %v2891_v33, %v2798_v42 }
 0x765   : > { %v2938_v40 = vadd.f32 %v2937_v44, %v2936_v43 }
 0x766   : > { %v2911_v48 = vmul.f32 %v2893_v37, %v2826_v45  ;;  %v2939_v50 = vsel %vm1442_vm5, %v2909_v46, 0.0 }
 0x767   : > { %v2940_v51 = vadd.f32 %v2939_v50, %v2938_v40 }
 0x768   : > { %v2943_v54 = vsel %vm1442_vm5, %v2911_v48, 0.0 }
 0x769   : > { %v2942_v53 = vadd.f32 %v2941_v9, %v2940_v51 }
 0x76b   : > { %v2801_v56 = vpop.f32.mrf.mxu2  ;;  %v2944_v57 = vadd.f32 %v2943_v54, %v2942_v53 }
 0x76c   : > { %v2913_v58 = vmul.f32 %v2895_v52, %v2801_v56 }
 0x76d   : > { %v2946_v59 = vadd.f32 %v2945_v55, %v2944_v57 }
 0x76e   : > { %v2947_v60 = vsel %vm1442_vm5, %v2913_v58, 0.0 }
 0x76f   : > { %v2948_v61 = vadd.f32 %v2947_v60, %v2946_v59 }
 0x771   : > { %2949 = vadd.xlane.f32.xlu0 %v2948_v61 }
 0x773   : > { %v2803_v62 = vpop.f32.mrf.mxu2 }
 0x7e4   : > { %v2950_v63 = vpop.xlane.xlu0 %2949 }
 0x7e5   : > { %v2955_v0 = vadd.f32 %v4221_v8, %v2950_v63 }
 0x7e7   : > { %2957 = vst.msk [vmem:[%s430_s16] sm:$0xf] %vm2956_vm6, %v2955_v0 }
 0x7e8 PF: > { %s25_s23 = sadd.s32 1, %s4274_s23  }
 0x7e9   : > { %p22_p7 = scmp.ge.s32.totalorder %s25_s23, 4  }
 0x7eb   :  { %24 = sbr.rel (!%p22_p7) target bundleno = 4 (0x4), region = 103 }
 0x7f0   :  { %2977 = vsyncpa [#allocation4], 1 }
 0x7f1   :  { %2979 = vsyncpa [#allocation4 + $0x1], 1 }

</bundles_post_ra>
